<compile_context>
chip_gen: v6e
topology: v6e:2x2x1
jax: 0.10.0
libtpu: 0.0.40
codegen_flags: <defaults>
</compile_context>

<pallas_src>
import functools

import jax
import jax.numpy as jnp
from jax import lax
from jax.experimental import pallas as pl
from jax.experimental.pallas import tpu as pltpu


def _round_up(x, m):
    return (x + m - 1) // m * m


def _cdiv(a, b):
    return -(-a // b)


# ---------------------------------------------------------------------------
# Fused kernel: depthwise 3x3 + BN + ReLU6 -> pointwise 1x1 (MXU) + BN + ReLU6
# ---------------------------------------------------------------------------
def _fused_dw_pw_kernel(xt_ref, w_dw_ref, dw_b_ref, w_pw_ref, pw_b_ref, o_ref,
                        *, stride, tile_h, halo, w_out_p):
    # xt_ref  : (1, s2*(tile_h+halo), wq, cp) row tile (with halo) of the
    #           phase-decomposed padded input for this (batch, row-tile):
    #           row p*(tile_h+halo)+i, col j == x_pad[b, s*(r*tile_h+i)+ph,
    #           s*j+pw, :] with p = ph*s + pw.
    # w_dw_ref: (9, cp)   depthwise taps (row kh*3+kw), dw-BN scale folded in
    # dw_b_ref: (1, cp)   folded depthwise BN bias
    # w_pw_ref: (cp, kp)  pointwise weight (mxu dtype), pw-BN scale folded in
    # pw_b_ref: (1, kp)   folded pointwise BN bias
    # o_ref   : (1, tile_h, w_out_p, kp)
    s = stride
    cp = w_dw_ref.shape[1]
    kp = o_ref.shape[3]
    blk = tile_h + halo

    wd = w_dw_ref[...]                                     # load once: (9, cp)
    acc = jnp.zeros((tile_h, w_out_p, cp), jnp.float32)
    for kh in range(3):                                    # static 3x3 -> unrolled MACs
        for kw in range(3):
            phase = (kh % s) * s + (kw % s)
            patch = xt_ref[0,
                           pl.ds(phase * blk + kh // s, tile_h),
                           pl.ds(kw // s, w_out_p), :]     # contiguous load
            acc = acc + patch * wd[3 * kh + kw]

    dw = jnp.clip(acc + dw_b_ref[0], 0.0, 6.0)             # DW BN bias + ReLU6

    # Pointwise 1x1 conv == matmul on the MXU, fused in-VMEM.  w_out_p is a
    # multiple of 8, so this reshape never crosses an (8,128) tile boundary.
    lhs = dw.reshape(tile_h * w_out_p, cp).astype(w_pw_ref.dtype)
    y = jnp.dot(lhs, w_pw_ref[...], preferred_element_type=jnp.float32)
    y = jnp.clip(y + pw_b_ref[0], 0.0, 6.0)                # PW BN bias + ReLU6
    o_ref[0] = y.reshape(tile_h, w_out_p, kp).astype(o_ref.dtype)


# ---------------------------------------------------------------------------
# Wrapper
# ---------------------------------------------------------------------------
def _fold_bn(gamma, beta, mean, var, eps=1e-5):
    scale = gamma / jnp.sqrt(var + eps)
    bias = beta - mean * scale
    return scale.astype(jnp.float32), bias.astype(jnp.float32)


def depth_separable_conv2d(x_nchw, params, stride, *, mxu_dtype=jnp.bfloat16):
    """Forward pass matching the PyTorch module (inference-mode BatchNorm)."""
    assert stride in (1, 2), "MobileNetV1 uses stride 1 or 2"
    n, c_in, h, w = x_nchw.shape
    c_out = params["w_pw"].shape[1]
    h_out = (h - 1) // stride + 1
    w_out = (w - 1) // stride + 1
    cp = _round_up(c_in, 128)            # lane-dense channel padding
    kp = _round_up(c_out, 128)
    s = stride
    s2 = s * s
    halo = 2 // s                        # extra rows per phase needed by the 3x3

    # Pad output width to a multiple of 8 sublanes (layout-free MXU reshape).
    w_out_p = _round_up(w_out, 8)
    wq = w_out_p + halo
    hq = h_out + halo

    # Row-tile size: >= ~512 MXU M rows per step, bounded by a VMEM budget that
    # stays safe under v7x's 64 MiB VMEM (double-buffered in/out + weights).
    mxu_bytes = jnp.dtype(mxu_dtype).itemsize
    tile_h = max(1, min(h_out, _cdiv(512, w_out_p)))

    def _footprint(th):
        in_tile = s2 * (th + halo) * wq * cp * 4
        out_tile = th * w_out_p * kp * 4
        stage = th * w_out_p * cp * 4                  # live depthwise result
        weights = (9 * cp + cp + kp) * 4 + cp * kp * mxu_bytes
        return 2 * (in_tile + out_tile + weights) + stage

    while tile_h > 1 and _footprint(tile_h) > 24 * 1024 * 1024:
        tile_h -= 1
    n_tiles = _cdiv(h_out, tile_h)
    hq_pad = n_tiles * tile_h + halo

    # --- layout glue: NCHW -> NHWC, zero-pad spatial + channel, decompose into
    #     stride*stride "phase" grids (kernel only issues contiguous loads),
    #     then gather overlapping row tiles (tile_h + halo) per grid step.
    pad_b = s * hq - h - 1               # top pad is always 1
    pad_r = s * wq - w - 1               # left pad is always 1
    x_nhwc = jnp.transpose(x_nchw, (0, 2, 3, 1)).astype(jnp.float32)
    x_pad = jnp.pad(x_nhwc, ((0, 0), (1, pad_b), (1, pad_r), (0, cp - c_in)))
    xq = x_pad.reshape(n, hq, s, wq, s, cp)
    xq = jnp.transpose(xq, (0, 2, 4, 1, 3, 5)).reshape(n, s2, hq, wq, cp)
    xq = jnp.pad(xq, ((0, 0), (0, 0), (0, hq_pad - hq), (0, 0), (0, 0)))
    xt = jnp.stack(
        [xq[:, :, r * tile_h:r * tile_h + tile_h + halo] for r in range(n_tiles)],
        axis=1)                                         # (n, n_tiles, s2, th+halo, wq, cp)
    xt = xt.reshape(n * n_tiles, s2 * (tile_h + halo), wq, cp)

    # --- fold BatchNorm: scales into the conv weights, bias stays in-kernel.
    dw_scale, dw_bias = _fold_bn(params["dw_gamma"], params["dw_beta"],
                                 params["dw_mean"], params["dw_var"])
    pw_scale, pw_bias = _fold_bn(params["pw_gamma"], params["pw_beta"],
                                 params["pw_mean"], params["pw_var"])

    w_dw = params["w_dw"].astype(jnp.float32).reshape(9, c_in) * dw_scale[None, :]
    w_dw = jnp.pad(w_dw, ((0, 0), (0, cp - c_in)))
    dw_b = jnp.pad(dw_bias, (0, cp - c_in))[None, :]

    w_pw = params["w_pw"].astype(jnp.float32) * pw_scale[None, :]
    w_pw = jnp.pad(w_pw, ((0, cp - c_in), (0, kp - c_out))).astype(mxu_dtype)
    pw_b = jnp.pad(pw_bias, (0, kp - c_out))[None, :]

    m_true = n * h_out * w_out
    cost = pl.CostEstimate(
        flops=int(2 * m_true * c_in * c_out + 18 * m_true * c_in),
        transcendentals=0,
        bytes_accessed=int(xt.size * 4 + w_dw.size * 4
                           + w_pw.size * mxu_bytes + m_true * c_out * 4),
    )

    blk_rows = s2 * (tile_h + halo)
    out = pl.pallas_call(
        functools.partial(_fused_dw_pw_kernel, stride=stride, tile_h=tile_h,
                          halo=halo, w_out_p=w_out_p),
        out_shape=jax.ShapeDtypeStruct((n, n_tiles * tile_h, w_out_p, kp),
                                       jnp.float32),
        grid_spec=pltpu.PrefetchScalarGridSpec(
            num_scalar_prefetch=0,
            grid=(n, n_tiles),
            in_specs=[
                # one row tile (with halo) per grid step -> O(tile) VMEM
                pl.BlockSpec((1, blk_rows, wq, cp),
                             lambda b, r: (b * n_tiles + r, 0, 0, 0)),
                pl.BlockSpec((9, cp), lambda b, r: (0, 0)),
                pl.BlockSpec((1, cp), lambda b, r: (0, 0)),
                pl.BlockSpec((cp, kp), lambda b, r: (0, 0)),
                pl.BlockSpec((1, kp), lambda b, r: (0, 0)),
            ],
            out_specs=pl.BlockSpec((1, tile_h, w_out_p, kp),
                                   lambda b, r: (b, r, 0, 0)),
        ),
        compiler_params=pltpu.CompilerParams(
            dimension_semantics=("parallel", "parallel"),
            vmem_limit_bytes=32 * 1024 * 1024),
        cost_estimate=cost,
    )(xt, w_dw, dw_b, w_pw, pw_b)

    y_nhwc = out[:, :h_out, :w_out, :c_out]           # drop row/width/lane padding
    return jnp.transpose(y_nhwc, (0, 3, 1, 2))        # back to NCHW


# ---------------------------------------------------------------------------
# Pure-JAX reference (for correctness check)
# ---------------------------------------------------------------------------
def _reference(x_nchw, params, stride):
    c_in = x_nchw.shape[1]
    w_dw_oihw = jnp.transpose(params["w_dw"], (2, 0, 1))[:, None]      # (Cin,1,3,3)
    y = lax.conv_general_dilated(
        x_nchw, w_dw_oihw, (stride, stride), ((1, 1), (1, 1)),
        feature_group_count=c_in,
        dimension_numbers=("NCHW", "OIHW", "NCHW"))
    s, b = _fold_bn(params["dw_gamma"], params["dw_beta"],
                    params["dw_mean"], params["dw_var"])
    y = jnp.clip(y * s[None, :, None, None] + b[None, :, None, None], 0.0, 6.0)

    w_pw_oihw = jnp.transpose(params["w_pw"], (1, 0))[:, :, None, None]  # (Cout,Cin,1,1)
    y = lax.conv_general_dilated(
        y, w_pw_oihw, (1, 1), ((0, 0), (0, 0)),
        dimension_numbers=("NCHW", "OIHW", "NCHW"))
    s, b = _fold_bn(params["pw_gamma"], params["pw_beta"],
                    params["pw_mean"], params["pw_var"])
    return jnp.clip(y * s[None, :, None, None] + b[None, :, None, None], 0.0, 6.0)


if __name__ == "__main__":
    N, C_IN, C_OUT, H, W = 2, 4, 8, 16, 16

    key = jax.random.PRNGKey(0)
    ks = jax.random.split(key, 8)
    x = jax.random.normal(ks[0], (N, C_IN, H, W), jnp.float32)

    params = {
        # depthwise 3x3 weight, stored as (3, 3, Cin) (PyTorch: (Cin, 1, 3, 3))
        "w_dw": 0.3 * jax.random.normal(ks[1], (3, 3, C_IN), jnp.float32),
        "dw_gamma": 1.0 + 0.1 * jax.random.normal(ks[2], (C_IN,), jnp.float32),
        "dw_beta": 0.1 * jax.random.normal(ks[3], (C_IN,), jnp.float32),
        "dw_mean": 0.05 * jax.random.normal(ks[4], (C_IN,), jnp.float32),
        "dw_var": jnp.abs(jax.random.normal(ks[5], (C_IN,), jnp.float32)) + 0.5,
        # pointwise 1x1 weight, stored as (Cin, Cout) (PyTorch: (Cout, Cin, 1, 1))
        "w_pw": 0.3 * jax.random.normal(ks[6], (C_IN, C_OUT), jnp.float32),
        "pw_gamma": jnp.ones((C_OUT,), jnp.float32),
        "pw_beta": jnp.zeros((C_OUT,), jnp.float32),
        "pw_mean": jnp.zeros((C_OUT,), jnp.float32),
        "pw_var": jnp.ones((C_OUT,), jnp.float32) + 0.1 * jnp.abs(
            jax.random.normal(ks[7], (C_OUT,), jnp.float32)),
    }

    for stride in (1, 2):                       # validate both MobileNet strides
        ref = jax.block_until_ready(_reference(x, params, stride))

        # f32 MXU path: tight check of the kernel logic / indexing.
        out32 = jax.block_until_ready(
            depth_separable_conv2d(x, params, stride, mxu_dtype=jnp.float32))
        assert out32.shape == ref.shape, (stride, out32.shape, ref.shape)
        err32 = float(jnp.max(jnp.abs(out32 - ref)))
        assert err32 < 1e-4, f"stride={stride} f32 path mismatch vs reference: {err32}"

        # default bf16 MXU path: looser tolerance (bf16 matmul rounding).
        outbf = jax.block_until_ready(depth_separable_conv2d(x, params, stride))
        assert outbf.shape == ref.shape, (stride, outbf.shape, ref.shape)
        errbf = float(jnp.max(jnp.abs(outbf - ref)))
        assert errbf < 1e-1, f"stride={stride} bf16 path mismatch vs reference: {errbf}"

    print("KERNEL_OK")
</pallas_src>

<mosaic_0001>
module attributes {stable_mosaic.version = 11 : i64} {
  func.func @_fused_dw_pw_kernel(%arg0: i32, %arg1: i32, %arg2: memref<1x18x18x128xf32, #tpu.memory_space<vmem>>, %arg3: memref<9x128xf32, #tpu.memory_space<vmem>>, %arg4: memref<1x128xf32, #tpu.memory_space<vmem>>, %arg5: memref<128x128xf32, #tpu.memory_space<vmem>>, %arg6: memref<1x128xf32, #tpu.memory_space<vmem>>, %arg7: memref<1x16x16x128xf32, #tpu.memory_space<vmem>>) attributes {dimension_semantics = [#tpu.dimension_semantics<parallel>, #tpu.dimension_semantics<parallel>], iteration_bounds = array<i64: 2, 1>, scalar_prefetch = 0 : i64, scratch_operands = 0 : i64, tpu.core_type = #tpu.core_type<tc>, window_params = [{transform_indices = @transform_0, window_bounds = array<i64: 1, 18, 18, 128>}, {pipeline_mode = #tpu.pipeline_mode<synchronous>, transform_indices = @transform_1, window_bounds = array<i64: 9, 128>}, {pipeline_mode = #tpu.pipeline_mode<synchronous>, transform_indices = @transform_2, window_bounds = array<i64: 1, 128>}, {pipeline_mode = #tpu.pipeline_mode<synchronous>, transform_indices = @transform_3, window_bounds = array<i64: 128, 128>}, {pipeline_mode = #tpu.pipeline_mode<synchronous>, transform_indices = @transform_4, window_bounds = array<i64: 1, 128>}, {transform_indices = @transform_5, window_bounds = array<i64: 1, 16, 16, 128>}]} {
    %c0 = arith.constant 0 : index
    %c0_0 = arith.constant 0 : index
    %0 = vector.load %arg3[%c0, %c0_0] : memref<9x128xf32, #tpu.memory_space<vmem>>, vector<9x128xf32>
    %cst = arith.constant 0.000000e+00 : f32
    %1 = vector.broadcast %cst : f32 to vector<16x16x128xf32>
    %c0_1 = arith.constant 0 : index
    %c0_2 = arith.constant 0 : index
    %c0_3 = arith.constant 0 : index
    %c0_4 = arith.constant 0 : index
    %2 = vector.load %arg2[%c0_1, %c0_2, %c0_3, %c0_4] : memref<1x18x18x128xf32, #tpu.memory_space<vmem>>, vector<1x16x16x128xf32>
    %3 = vector.shape_cast %2 : vector<1x16x16x128xf32> to vector<16x16x128xf32>
    %4 = vector.extract_strided_slice %0 {offsets = [0, 0], sizes = [1, 128], strides = [1, 1]} : vector<9x128xf32> to vector<1x128xf32>
    %5 = vector.shape_cast %4 : vector<1x128xf32> to vector<128xf32>
    %6 = vector.shape_cast %5 : vector<128xf32> to vector<1x1x128xf32>
    %7 = vector.broadcast %6 : vector<1x1x128xf32> to vector<16x16x128xf32>
    %8 = arith.mulf %3, %7 : vector<16x16x128xf32>
    %9 = arith.addf %1, %8 : vector<16x16x128xf32>
    %c0_5 = arith.constant 0 : index
    %c0_6 = arith.constant 0 : index
    %c1 = arith.constant 1 : index
    %c0_7 = arith.constant 0 : index
    %10 = vector.load %arg2[%c0_5, %c0_6, %c1, %c0_7] : memref<1x18x18x128xf32, #tpu.memory_space<vmem>>, vector<1x16x16x128xf32>
    %11 = vector.shape_cast %10 : vector<1x16x16x128xf32> to vector<16x16x128xf32>
    %12 = vector.extract_strided_slice %0 {offsets = [1, 0], sizes = [1, 128], strides = [1, 1]} : vector<9x128xf32> to vector<1x128xf32>
    %13 = vector.shape_cast %12 : vector<1x128xf32> to vector<128xf32>
    %14 = vector.shape_cast %13 : vector<128xf32> to vector<1x1x128xf32>
    %15 = vector.broadcast %14 : vector<1x1x128xf32> to vector<16x16x128xf32>
    %16 = arith.mulf %11, %15 : vector<16x16x128xf32>
    %17 = arith.addf %9, %16 : vector<16x16x128xf32>
    %c0_8 = arith.constant 0 : index
    %c0_9 = arith.constant 0 : index
    %c2 = arith.constant 2 : index
    %c0_10 = arith.constant 0 : index
    %18 = vector.load %arg2[%c0_8, %c0_9, %c2, %c0_10] : memref<1x18x18x128xf32, #tpu.memory_space<vmem>>, vector<1x16x16x128xf32>
    %19 = vector.shape_cast %18 : vector<1x16x16x128xf32> to vector<16x16x128xf32>
    %20 = vector.extract_strided_slice %0 {offsets = [2, 0], sizes = [1, 128], strides = [1, 1]} : vector<9x128xf32> to vector<1x128xf32>
    %21 = vector.shape_cast %20 : vector<1x128xf32> to vector<128xf32>
    %22 = vector.shape_cast %21 : vector<128xf32> to vector<1x1x128xf32>
    %23 = vector.broadcast %22 : vector<1x1x128xf32> to vector<16x16x128xf32>
    %24 = arith.mulf %19, %23 : vector<16x16x128xf32>
    %25 = arith.addf %17, %24 : vector<16x16x128xf32>
    %c0_11 = arith.constant 0 : index
    %c1_12 = arith.constant 1 : index
    %c0_13 = arith.constant 0 : index
    %c0_14 = arith.constant 0 : index
    %26 = vector.load %arg2[%c0_11, %c1_12, %c0_13, %c0_14] : memref<1x18x18x128xf32, #tpu.memory_space<vmem>>, vector<1x16x16x128xf32>
    %27 = vector.shape_cast %26 : vector<1x16x16x128xf32> to vector<16x16x128xf32>
    %28 = vector.extract_strided_slice %0 {offsets = [3, 0], sizes = [1, 128], strides = [1, 1]} : vector<9x128xf32> to vector<1x128xf32>
    %29 = vector.shape_cast %28 : vector<1x128xf32> to vector<128xf32>
    %30 = vector.shape_cast %29 : vector<128xf32> to vector<1x1x128xf32>
    %31 = vector.broadcast %30 : vector<1x1x128xf32> to vector<16x16x128xf32>
    %32 = arith.mulf %27, %31 : vector<16x16x128xf32>
    %33 = arith.addf %25, %32 : vector<16x16x128xf32>
    %c0_15 = arith.constant 0 : index
    %c1_16 = arith.constant 1 : index
    %c1_17 = arith.constant 1 : index
    %c0_18 = arith.constant 0 : index
    %34 = vector.load %arg2[%c0_15, %c1_16, %c1_17, %c0_18] : memref<1x18x18x128xf32, #tpu.memory_space<vmem>>, vector<1x16x16x128xf32>
    %35 = vector.shape_cast %34 : vector<1x16x16x128xf32> to vector<16x16x128xf32>
    %36 = vector.extract_strided_slice %0 {offsets = [4, 0], sizes = [1, 128], strides = [1, 1]} : vector<9x128xf32> to vector<1x128xf32>
    %37 = vector.shape_cast %36 : vector<1x128xf32> to vector<128xf32>
    %38 = vector.shape_cast %37 : vector<128xf32> to vector<1x1x128xf32>
    %39 = vector.broadcast %38 : vector<1x1x128xf32> to vector<16x16x128xf32>
    %40 = arith.mulf %35, %39 : vector<16x16x128xf32>
    %41 = arith.addf %33, %40 : vector<16x16x128xf32>
    %c0_19 = arith.constant 0 : index
    %c1_20 = arith.constant 1 : index
    %c2_21 = arith.constant 2 : index
    %c0_22 = arith.constant 0 : index
    %42 = vector.load %arg2[%c0_19, %c1_20, %c2_21, %c0_22] : memref<1x18x18x128xf32, #tpu.memory_space<vmem>>, vector<1x16x16x128xf32>
    %43 = vector.shape_cast %42 : vector<1x16x16x128xf32> to vector<16x16x128xf32>
    %44 = vector.extract_strided_slice %0 {offsets = [5, 0], sizes = [1, 128], strides = [1, 1]} : vector<9x128xf32> to vector<1x128xf32>
    %45 = vector.shape_cast %44 : vector<1x128xf32> to vector<128xf32>
    %46 = vector.shape_cast %45 : vector<128xf32> to vector<1x1x128xf32>
    %47 = vector.broadcast %46 : vector<1x1x128xf32> to vector<16x16x128xf32>
    %48 = arith.mulf %43, %47 : vector<16x16x128xf32>
    %49 = arith.addf %41, %48 : vector<16x16x128xf32>
    %c0_23 = arith.constant 0 : index
    %c2_24 = arith.constant 2 : index
    %c0_25 = arith.constant 0 : index
    %c0_26 = arith.constant 0 : index
    %50 = vector.load %arg2[%c0_23, %c2_24, %c0_25, %c0_26] : memref<1x18x18x128xf32, #tpu.memory_space<vmem>>, vector<1x16x16x128xf32>
    %51 = vector.shape_cast %50 : vector<1x16x16x128xf32> to vector<16x16x128xf32>
    %52 = vector.extract_strided_slice %0 {offsets = [6, 0], sizes = [1, 128], strides = [1, 1]} : vector<9x128xf32> to vector<1x128xf32>
    %53 = vector.shape_cast %52 : vector<1x128xf32> to vector<128xf32>
    %54 = vector.shape_cast %53 : vector<128xf32> to vector<1x1x128xf32>
    %55 = vector.broadcast %54 : vector<1x1x128xf32> to vector<16x16x128xf32>
    %56 = arith.mulf %51, %55 : vector<16x16x128xf32>
    %57 = arith.addf %49, %56 : vector<16x16x128xf32>
    %c0_27 = arith.constant 0 : index
    %c2_28 = arith.constant 2 : index
    %c1_29 = arith.constant 1 : index
    %c0_30 = arith.constant 0 : index
    %58 = vector.load %arg2[%c0_27, %c2_28, %c1_29, %c0_30] : memref<1x18x18x128xf32, #tpu.memory_space<vmem>>, vector<1x16x16x128xf32>
    %59 = vector.shape_cast %58 : vector<1x16x16x128xf32> to vector<16x16x128xf32>
    %60 = vector.extract_strided_slice %0 {offsets = [7, 0], sizes = [1, 128], strides = [1, 1]} : vector<9x128xf32> to vector<1x128xf32>
    %61 = vector.shape_cast %60 : vector<1x128xf32> to vector<128xf32>
    %62 = vector.shape_cast %61 : vector<128xf32> to vector<1x1x128xf32>
    %63 = vector.broadcast %62 : vector<1x1x128xf32> to vector<16x16x128xf32>
    %64 = arith.mulf %59, %63 : vector<16x16x128xf32>
    %65 = arith.addf %57, %64 : vector<16x16x128xf32>
    %c0_31 = arith.constant 0 : index
    %c2_32 = arith.constant 2 : index
    %c2_33 = arith.constant 2 : index
    %c0_34 = arith.constant 0 : index
    %66 = vector.load %arg2[%c0_31, %c2_32, %c2_33, %c0_34] : memref<1x18x18x128xf32, #tpu.memory_space<vmem>>, vector<1x16x16x128xf32>
    %67 = vector.shape_cast %66 : vector<1x16x16x128xf32> to vector<16x16x128xf32>
    %68 = vector.extract_strided_slice %0 {offsets = [8, 0], sizes = [1, 128], strides = [1, 1]} : vector<9x128xf32> to vector<1x128xf32>
    %69 = vector.shape_cast %68 : vector<1x128xf32> to vector<128xf32>
    %70 = vector.shape_cast %69 : vector<128xf32> to vector<1x1x128xf32>
    %71 = vector.broadcast %70 : vector<1x1x128xf32> to vector<16x16x128xf32>
    %72 = arith.mulf %67, %71 : vector<16x16x128xf32>
    %73 = arith.addf %65, %72 : vector<16x16x128xf32>
    %c0_35 = arith.constant 0 : index
    %c0_36 = arith.constant 0 : index
    %74 = vector.load %arg4[%c0_35, %c0_36] : memref<1x128xf32, #tpu.memory_space<vmem>>, vector<1x128xf32>
    %75 = vector.shape_cast %74 : vector<1x128xf32> to vector<128xf32>
    %76 = vector.shape_cast %75 : vector<128xf32> to vector<1x1x128xf32>
    %77 = vector.broadcast %76 : vector<1x1x128xf32> to vector<16x16x128xf32>
    %78 = arith.addf %73, %77 : vector<16x16x128xf32>
    %cst_37 = arith.constant 0.000000e+00 : f32
    %cst_38 = arith.constant 6.000000e+00 : f32
    %79 = vector.broadcast %cst_37 : f32 to vector<16x16x128xf32>
    %80 = arith.maximumf %79, %78 : vector<16x16x128xf32>
    %81 = vector.broadcast %cst_38 : f32 to vector<16x16x128xf32>
    %82 = arith.minimumf %81, %80 : vector<16x16x128xf32>
    %83 = vector.shape_cast %82 : vector<16x16x128xf32> to vector<256x128xf32>
    %c0_39 = arith.constant 0 : index
    %c0_40 = arith.constant 0 : index
    %84 = vector.load %arg5[%c0_39, %c0_40] : memref<128x128xf32, #tpu.memory_space<vmem>>, vector<128x128xf32>
    %cst_41 = arith.constant dense<0.000000e+00> : vector<256x128xf32>
    %85 = tpu.matmul %83, %84, %cst_41 {dimension_numbers = #tpu.dot_dimension_numbers<[1], [0], [0], [1], [0, 0, 1, 1], [], []>} : vector<256x128xf32>, vector<128x128xf32>, vector<256x128xf32> -> vector<256x128xf32>
    %c0_42 = arith.constant 0 : index
    %c0_43 = arith.constant 0 : index
    %86 = vector.load %arg6[%c0_42, %c0_43] : memref<1x128xf32, #tpu.memory_space<vmem>>, vector<1x128xf32>
    %87 = vector.shape_cast %86 : vector<1x128xf32> to vector<128xf32>
    %88 = vector.shape_cast %87 : vector<128xf32> to vector<1x128xf32>
    %89 = vector.broadcast %88 : vector<1x128xf32> to vector<256x128xf32>
    %90 = arith.addf %85, %89 : vector<256x128xf32>
    %cst_44 = arith.constant 0.000000e+00 : f32
    %cst_45 = arith.constant 6.000000e+00 : f32
    %91 = vector.broadcast %cst_44 : f32 to vector<256x128xf32>
    %92 = arith.maximumf %91, %90 : vector<256x128xf32>
    %93 = vector.broadcast %cst_45 : f32 to vector<256x128xf32>
    %94 = arith.minimumf %93, %92 : vector<256x128xf32>
    %95 = vector.shape_cast %94 : vector<256x128xf32> to vector<16x16x128xf32>
    %c0_46 = arith.constant 0 : index
    %c0_47 = arith.constant 0 : index
    %c0_48 = arith.constant 0 : index
    %c0_49 = arith.constant 0 : index
    %96 = vector.load %arg7[%c0_46, %c0_47, %c0_48, %c0_49] : memref<1x16x16x128xf32, #tpu.memory_space<vmem>>, vector<1x16x16x128xf32>
    %97 = vector.shape_cast %96 : vector<1x16x16x128xf32> to vector<16x16x128xf32>
    %98 = vector.shape_cast %95 : vector<16x16x128xf32> to vector<1x16x16x128xf32>
    tpu.vector_store %arg7[%c0_46, %c0_47, %c0_48, %c0_49], %98 {strides = array<i32>} : memref<1x16x16x128xf32, #tpu.memory_space<vmem>>, vector<1x16x16x128xf32>,
    return
  }
  func.func @transform_0(%arg0: i32, %arg1: i32) -> (i32, i32, i32, i32) {
    %c1_i32 = arith.constant 1 : i32
    %0 = arith.muli %arg0, %c1_i32 : i32
    %1 = arith.addi %0, %arg1 : i32
    %c0_i32 = arith.constant 0 : i32
    %c0_i32_0 = arith.constant 0 : i32
    %c0_i32_1 = arith.constant 0 : i32
    %c0_i32_2 = arith.constant 0 : i32
    return %1, %c0_i32, %c0_i32_0, %c0_i32_1 : i32, i32, i32, i32
  }
  func.func @transform_1(%arg0: i32, %arg1: i32) -> (i32, i32) {
    %c0_i32 = arith.constant 0 : i32
    %c0_i32_0 = arith.constant 0 : i32
    %c0_i32_1 = arith.constant 0 : i32
    return %c0_i32, %c0_i32_0 : i32, i32
  }
  func.func @transform_2(%arg0: i32, %arg1: i32) -> (i32, i32) {
    %c0_i32 = arith.constant 0 : i32
    %c0_i32_0 = arith.constant 0 : i32
    %c0_i32_1 = arith.constant 0 : i32
    return %c0_i32, %c0_i32_0 : i32, i32
  }
  func.func @transform_3(%arg0: i32, %arg1: i32) -> (i32, i32) {
    %c0_i32 = arith.constant 0 : i32
    %c0_i32_0 = arith.constant 0 : i32
    %c0_i32_1 = arith.constant 0 : i32
    return %c0_i32, %c0_i32_0 : i32, i32
  }
  func.func @transform_4(%arg0: i32, %arg1: i32) -> (i32, i32) {
    %c0_i32 = arith.constant 0 : i32
    %c0_i32_0 = arith.constant 0 : i32
    %c0_i32_1 = arith.constant 0 : i32
    return %c0_i32, %c0_i32_0 : i32, i32
  }
  func.func @transform_5(%arg0: i32, %arg1: i32) -> (i32, i32, i32, i32) {
    %c0_i32 = arith.constant 0 : i32
    %c0_i32_0 = arith.constant 0 : i32
    %c0_i32_1 = arith.constant 0 : i32
    return %arg0, %arg1, %c0_i32, %c0_i32_0 : i32, i32, i32, i32
  }
}

</mosaic_0001>

<bundles_post_ra>
// kernel: tpu_custom_call.1
= control target key start
LH: loop header
LB: loop body
LE: loop exit
PB: predicated region body
PF: predicated region fallthrough
CT: control target
= control target key end

     0   :  { %10 = vsyncpa [#allocation3], 0  ;;  %s3403_s0 = inlined_call_operand.vmem [shape: f32[2,18,18,128], index: 0, kind: input, shape index: {}]   ;;  %s3404_s1 = inlined_call_operand.vmem [shape: f32[9,128], index: 1, kind: input, shape index: {}]   ;;  %s3405_s2 = inlined_call_operand.vmem [shape: f32[1,128], index: 2, kind: input, shape index: {}]   ;;  %s3406_s3 = inlined_call_operand.vmem [shape: f32[128,128], index: 3, kind: input, shape index: {}]   ;;  %s3407_s4 = inlined_call_operand.vmem [shape: f32[1,128], index: 4, kind: input, shape index: {}]   ;;  %s3408_s5 = inlined_call_operand.hbm [shape: f32[2,16,16,128], index: 5, kind: output, shape index: {}]  }
   0x1   :  { %12 = vsyncpa [#allocation3 + $0x1], 0  ;;  %s2225_s18 = smov 0   ;;  %s2227_s19 = smov 0  }
   0x2   :  { %s2229_s20 = smov 0   ;;  %s2231_s21 = smov 0  }
   0x3   :  { %s2233_s22 = smov 0   ;;  %s2235_s23 = smov 0  }
   0x4 LB: > { %s1686_s24 = sadd.s32 4294967295, %s2190_s23   ;;  %s1687_s25 = sadd.s32 4294967294, %s2190_s23   ;;  %s2190_s23 = sphi %s2235_s23, %s18_s23   ;;  %s2186_s22 = sphi %s2233_s22, %s3415_s22   ;;  %s2182_s21 = sphi %s2231_s21, %s3414_s21   ;;  %s2178_s20 = sphi %s2229_s20, %s3413_s20   ;;  %s2174_s19 = sphi %s2227_s19, %s3412_s19   ;;  %s2170_s18 = sphi %s2225_s18, %s3411_s18  }
   0x5   : > { %s30_s26 = sadd.s32 1, %s2186_s22  ;;  %s151_s27 = sadd.s32 1, %s2178_s20 }
   0x6   : > { %p32_p0 = scmp.ge.s32.totalorder %s30_s26, 2  ;;  %p161_p1 = scmp.ne.s32.totalorder %s2178_s20, %s2174_s19 }
   0x7   : > { %p162_p2 = scmp.eq.s32.totalorder %s1686_s24, 1  ;;  %p167_p3 = scmp.ne.s32.totalorder %s2174_s19, %s2170_s18 }
   0x8   : > { %s3417_s26 = smov (%p32_p0, %s30_s26), 0  ;;  %p168_p5 = scmp.eq.s32.totalorder %s1687_s25, 1 }
   0x9   : > { %p2265_p4 = por %p162_p2, %p161_p1  ;;  %s146_s29 = ssub.s32 %s2186_s22, %s3417_s26 }
   0xa   : > { %p1690_p6 = scmp.ge.s32.totalorder %s2190_s23, 1  ;;  %p149_p7 = scmp.eq.s32.totalorder %s146_s29, 0 }
   0xb   : > { %p2272_p8 = por %p168_p5, %p167_p3  ;;  %p208_p9 = scmp.lt.s32.totalorder %s2190_s23, 3 }
   0xc   : > { %s2278_s6 = scalar_select %p149_p7, %s2178_s20, %s151_s27  }
   0xd   : > { %p209_p10 = pnand %p1690_p6, %p208_p9 }
   0xe   : > { %p238_p11 = scmp.lt.s32.totalorder (!%p209_p10), %s2182_s21, 1  ;;  %s1893_s15 = sshll.u32 (!%p209_p10), %s2182_s21, 12 }
   0xf   : > { %212 = sbr.rel (%p209_p10) target bundleno = 421 (0x1a5), region = 40  ;;  %s3350_s25 = scalar_lea.hbm (!%p209_p10), %s3408_s5, %s1893_s15 }
  0x10   : > { %s2192_s29 = smov (!%p209_p10), [#allocation2]  }
  0x11   : > { %s2118_s7 = sshll.u32 (!%p209_p10), %s2192_s29, 4  ;;  %s2119_s7 = int_to_ptr.vmem [resolvable:$false] %s2118_s7 }
  0x12   : > { %s2120_s9 = scalar_lea.vmem (!%p209_p10), %s2119_s7, 8192 }
  0x14   : > { %v1267_v0 = vld [vmem:[%s3406_s3 + $0x78] sm:$0xff]  ;;  %v1266_v1 = vld [vmem:[%s3406_s3 + $0x70] sm:$0xff]  ;;  %v279_v2 = vlaneseq  ;;  %v1265_v3 = vld [vmem:[%s3406_s3 + $0x68] sm:$0xff]  ;;  %s239_s13 = scalar_select %p238_p11, %s2182_s21, 1 }
  0x15   : > { %1942 = vmatprep.subr.mxu0 %v1267_v0  ;;  %2022 = vmatprep.subr.mxu1 %v1267_v0  ;;  %v1264_v5 = vld [vmem:[%s3406_s3 + $0x60] sm:$0xff]  ;;  %v1263_v11 = vld [vmem:[%s3406_s3 + $0x58] sm:$0xff]  ;;  %v1262_v23 = vld [vmem:[%s3406_s3 + $0x50] sm:$0xff] }
  0x16   : > { %1943 = vmatpush3.msra.mxu0 %v1267_v0  ;;  %2038 = vmatpush3.msra.mxu1 %v1267_v0  ;;  %v280_v4 = vshrl.u32 %v279_v2, 7  ;;  %s2054_s16 = smul.u32 432, %s239_s13  ;;  %v245_v8 = vld [vmem:[%s3404_s1] sm:$0xff]  ;;  %v1261_v28 = vld [vmem:[%s3406_s3 + $0x48] sm:$0xff]  ;;  %v1259_v48 = vld [vmem:[%s3406_s3 + $0x38] sm:$0xff] }
  0x17   : > { %1944 = vmatprep.subr.mxu0 %v1266_v1  ;;  %2023 = vmatprep.subr.mxu1 %v1266_v1  ;;  %v2332_v29 = vld [vmem:[%s3404_s1 + $0x8] ss:$0 sm:$0xff]  ;;  %v1260_v42 = vld [vmem:[%s3406_s3 + $0x40] sm:$0xff]  ;;  %v1258_v2 = vld [vmem:[%s3406_s3 + $0x30] sm:$0xff] }
  0x18   : > { %1945 = vmatpush3.msra.mxu0 %v1266_v1  ;;  %2039 = vmatpush3.msra.mxu1 %v1266_v1  ;;  %v281_v6 = vsub.s32 0, %v280_v4  ;;  %v381_v7 = vsub.s32 1, %v280_v4  ;;  %v481_v9 = vsub.s32 2, %v280_v4  ;;  %v582_v10 = vsub.s32 3, %v280_v4  ;;  %s2303_s8 = scalar_lea.vmem %s3403_s0, %s2054_s16 }
  0x19   : > { %1946 = vmatprep.subr.mxu0 %v1265_v3  ;;  %2024 = vmatprep.subr.mxu1 %v1265_v3  ;;  %v682_v14 = vsub.s32 4, %v280_v4  ;;  %v782_v15 = vsub.s32 5, %v280_v4  ;;  %v247_v16 = vld [vmem:[%s2303_s8] sm:$0xff]  ;;  %v883_v21 = vsub.s32 6, %v280_v4  ;;  %v983_v22 = vsub.s32 7, %v280_v4  ;;  %v2322_v26 = vld [vmem:[%s2303_s8 + $0x18] sm:$0xff] }
  0x1a   : > { %1947 = vmatpush3.msra.mxu0 %v1265_v3  ;;  %2040 = vmatpush3.msra.mxu1 %v1265_v3  ;;  %v2305_v12 = vrot.slane %v245_v8, %v281_v6  ;;  %v2307_v13 = vrot.slane %v245_v8, %v381_v7  ;;  %v347_v17 = vld [vmem:[%s2303_s8 + $0x1] sm:$0xff]  ;;  %v2312_v19 = vrot.slane %v245_v8, %v481_v9  ;;  %v2336_v31 = vld [vmem:[%s2303_s8 + $0x19] sm:$0xff]  ;;  %v2370_v49 = vld [vmem:[%s2303_s8 + $0x30] sm:$0xff] }
  0x1b   : > { %1948 = vmatprep.subr.mxu0 %v1264_v5  ;;  %2025 = vmatprep.subr.mxu1 %v1264_v5  ;;  %v447_v18 = vld [vmem:[%s2303_s8 + $0x2] sm:$0xff]  ;;  %v2314_v20 = vrot.slane %v245_v8, %v582_v10  ;;  %v2324_v27 = vrot.slane %v245_v8, %v682_v14  ;;  %v2338_v32 = vrot.slane %v245_v8, %v782_v15  ;;  %v2350_v40 = vld [vmem:[%s2303_s8 + $0x1a] sm:$0xff]  ;;  %v2360_v45 = vld [vmem:[%s2303_s8 + $0x32] sm:$0xff] }
  0x1c   : > { %1949 = vmatpush3.msra.mxu0 %v1264_v5  ;;  %2041 = vmatpush3.msra.mxu1 %v1264_v5  ;;  %v283_v24 = vmul.f32 %v2305_v12, %v247_v16  ;;  %v383_v25 = vmul.f32 %v2307_v13, %v347_v17  ;;  %v483_v30 = vmul.f32 %v2312_v19, %v447_v18  ;;  %v263_v36 = vld [vmem:[%s2303_s8 + $0xc0] sm:$0xff]  ;;  %v2364_v47 = vld [vmem:[%s2303_s8 + $0xd8] sm:$0xff]  ;;  %v248_v58 = vld [vmem:[%s2303_s8 + $0x8] sm:$0xff] }
  0x1d   : > { %1950 = vmatprep.subr.mxu0 %v1263_v11  ;;  %2026 = vmatprep.subr.mxu1 %v1263_v11  ;;  %v584_v34 = vmul.f32 %v2322_v26, %v2314_v20  ;;  %v2342_v35 = vrot.slane %v245_v8, %v883_v21  ;;  %v363_v37 = vld [vmem:[%s2303_s8 + $0xc1] sm:$0xff]  ;;  %v684_v39 = vmul.f32 %v2336_v31, %v2324_v27  ;;  %v2373_v50 = vld [vmem:[%s2303_s8 + $0x31] sm:$0xff]  ;;  %v2386_v57 = vld [vmem:[%s2303_s8 + $0xd9] sm:$0xff] }
  0x1e   : > { %1951 = vmatpush3.msra.mxu0 %v1263_v11  ;;  %2042 = vmatpush3.msra.mxu1 %v1263_v11  ;;  %v415_v33 = vadd.f32 %v383_v25, %v283_v24  ;;  %v463_v38 = vld [vmem:[%s2303_s8 + $0xc2] sm:$0xff]  ;;  %v2352_v41 = vrot.slane %v245_v8, %v983_v22  ;;  %v784_v44 = vmul.f32 %v2350_v40, %v2338_v32  ;;  %v2395_v63 = vld [vmem:[%s2303_s8 + $0xda] sm:$0xff]  ;;  %v2398_v0 = vld [vmem:[%s2303_s8 + $0xf0] sm:$0xff] }
  0x1f   : > { %1952 = vmatprep.subr.mxu0 %v1262_v23  ;;  %2027 = vmatprep.subr.mxu1 %v1262_v23  ;;  %v299_v46 = vmul.f32 %v2305_v12, %v263_v36  ;;  %v2377_v51 = vmul.f32 %v2332_v29, %v2360_v45  ;;  %v399_v52 = vmul.f32 %v2307_v13, %v363_v37  ;;  %v348_v59 = vld [vmem:[%s2303_s8 + $0x9] sm:$0xff]  ;;  %v2409_v6 = vld [vmem:[%s2303_s8 + $0x20] sm:$0xff]  ;;  %v2412_v8 = vld [vmem:[%s2303_s8 + $0xf1] sm:$0xff] }
  0x20   : > { %1953 = vmatpush3.msra.mxu0 %v1262_v23  ;;  %2043 = vmatpush3.msra.mxu1 %v1262_v23  ;;  %v515_v43 = vadd.f32 %v483_v30, %v415_v33  ;;  %v499_v53 = vmul.f32 %v2312_v19, %v463_v38  ;;  %v885_v55 = vmul.f32 %v2370_v49, %v2342_v35  ;;  %v448_v1 = vld [vmem:[%s2303_s8 + $0xa] sm:$0xff]  ;;  %v2423_v18 = vld [vmem:[%s2303_s8 + $0xf2] sm:$0xff]  ;;  %v2428_v23 = vld [vmem:[%s2303_s8 + $0x21] sm:$0xff] }
  0x21   : > { %1954 = vmatprep.subr.mxu0 %v1261_v28  ;;  %2028 = vmatprep.subr.mxu1 %v1261_v28  ;;  %v985_v56 = vmul.f32 %v2373_v50, %v2352_v41  ;;  %v431_v60 = vadd.f32 %v399_v52, %v299_v46  ;;  %v600_v61 = vmul.f32 %v2364_v47, %v2314_v20  ;;  %v1257_v11 = vld [vmem:[%s3406_s3 + $0x28] sm:$0xff]  ;;  %v1256_v25 = vld [vmem:[%s3406_s3 + $0x20] sm:$0xff]  ;;  %v1255_v46 = vld [vmem:[%s3406_s3 + $0x18] sm:$0xff] }
  0x22   : > { %1955 = vmatpush3.msra.mxu0 %v1261_v28  ;;  %2044 = vmatpush3.msra.mxu1 %v1261_v28  ;;  %v616_v54 = vadd.f32 %v584_v34, %v515_v43  ;;  %v700_v62 = vmul.f32 %v2386_v57, %v2324_v27  ;;  %v800_v4 = vmul.f32 %v2395_v63, %v2338_v32  ;;  %v264_v24 = vld [vmem:[%s2303_s8 + $0xc8] sm:$0xff] }
  0x23   : > { %1956 = vmatprep.subr.mxu0 %v1260_v42  ;;  %2029 = vmatprep.subr.mxu1 %v1260_v42  ;;  %v901_v5 = vmul.f32 %v2398_v0, %v2342_v35  ;;  %v531_v7 = vadd.f32 %v499_v53, %v431_v60  ;;  %v284_v9 = vmul.f32 %v2305_v12, %v248_v58  ;;  %v2439_v34 = vld [vmem:[%s2303_s8 + $0x22] sm:$0xff]  ;;  %v464_v43 = vld [vmem:[%s2303_s8 + $0xca] sm:$0xff] }
  0x24   : > { %1957 = vmatpush3.msra.mxu0 %v1260_v42  ;;  %2045 = vmatpush3.msra.mxu1 %v1260_v42  ;;  %v716_v3 = vadd.f32 %v684_v39, %v616_v54  ;;  %v384_v10 = vmul.f32 %v2307_v13, %v348_v59  ;;  %v1001_v15 = vmul.f32 %v2412_v8, %v2352_v41  ;;  %v364_v36 = vld [vmem:[%s2303_s8 + $0xc9] sm:$0xff]  ;;  %v2445_v42 = vld [vmem:[%s2303_s8 + $0x38] sm:$0xff]  ;;  %v2460_v54 = vld [vmem:[%s3405_s2] ss:$0 sm:$0xff] }
  0x25   : > { %1958 = vmatprep.subr.mxu0 %v1259_v48  ;;  %2030 = vmatprep.subr.mxu1 %v1259_v48  ;;  %v484_v16 = vmul.f32 %v2312_v19, %v448_v1  ;;  %v632_v17 = vadd.f32 %v600_v61, %v531_v7  ;;  %v585_v22 = vmul.f32 %v2409_v6, %v2314_v20  ;;  %v2474_v7 = vld [vmem:[%s2303_s8 + $0xe1] sm:$0xff] }
  0x26   : > { %1959 = vmatpush3.msra.mxu0 %v1259_v48  ;;  %2046 = vmatpush3.msra.mxu1 %v1259_v48  ;;  %v816_v14 = vadd.f32 %v784_v44, %v716_v3  ;;  %v416_v21 = vadd.f32 %v384_v10, %v284_v9  ;;  %v1101_v30 = vmul.f32 %v2332_v29, %v2423_v18  ;;  %v2449_v44 = vld [vmem:[%s2303_s8 + $0xe0] sm:$0xff] }
  0x27   : > { %1960 = vmatprep.subr.mxu0 %v1258_v2  ;;  %2031 = vmatprep.subr.mxu1 %v1258_v2  ;;  %v685_v33 = vmul.f32 %v2428_v23, %v2324_v27  ;;  %v732_v37 = vadd.f32 %v700_v62, %v632_v17  ;;  %v785_v39 = vmul.f32 %v2439_v34, %v2338_v32  ;;  %v2471_v3 = vld [vmem:[%s2303_s8 + $0x39] sm:$0xff] }
  0x28   : > { %1961 = vmatpush3.msra.mxu0 %v1258_v2  ;;  %2047 = vmatpush3.msra.mxu1 %v1258_v2  ;;  %v917_v28 = vadd.f32 %v885_v55, %v816_v14  ;;  %v516_v38 = vadd.f32 %v484_v16, %v416_v21  ;;  %v886_v52 = vmul.f32 %v2445_v42, %v2342_v35  ;;  %v2485_v16 = vld [vmem:[%s2303_s8 + $0x3a] sm:$0xff]  ;;  %v2488_v21 = vld [vmem:[%s2303_s8 + $0xe2] sm:$0xff] }
  0x29   : > { %1962 = vmatprep.subr.mxu0 %v1257_v11  ;;  %2032 = vmatprep.subr.mxu1 %v1257_v11  ;;  %v300_v53 = vmul.f32 %v2305_v12, %v264_v24  ;;  %v832_v55 = vadd.f32 %v800_v4, %v732_v37  ;;  %v400_v59 = vmul.f32 %v2307_v13, %v364_v36  ;;  %v1252_v24 = vld [vmem:[%s3406_s3] sm:$0xff] }
  0x2a   : > { %1963 = vmatpush3.msra.mxu0 %v1257_v11  ;;  %2048 = vmatpush3.msra.mxu1 %v1257_v11  ;;  %v1017_v48 = vadd.f32 %v985_v56, %v917_v28  ;;  %v617_v58 = vadd.f32 %v585_v22, %v516_v38  ;;  %v1254_v56 = vld [vmem:[%s3406_s3 + $0x10] sm:$0xff]  ;;  %v500_v61 = vmul.f32 %v2312_v19, %v464_v43  ;;  %v2491_v22 = vld [vmem:[%s2303_s8 + $0xf8] sm:$0xff] }
  0x2b   : > { %1964 = vmatprep.subr.mxu0 %v1256_v25  ;;  %2033 = vmatprep.subr.mxu1 %v1256_v25  ;;  %v601_v62 = vmul.f32 %v2449_v44, %v2314_v20  ;;  %v933_v1 = vadd.f32 %v901_v5, %v832_v55  ;;  %v432_v4 = vadd.f32 %v400_v59, %v300_v53  ;;  %v2510_v55 = vld [vmem:[%s2303_s8 + $0xf9] sm:$0xff] }
  0x2c   : > { %1965 = vmatpush3.msra.mxu0 %v1256_v25  ;;  %2049 = vmatpush3.msra.mxu1 %v1256_v25  ;;  %v1117_v60 = vadd.f32 %v2377_v51, %v1017_v48  ;;  %v717_v2 = vadd.f32 %v685_v33, %v617_v58  ;;  %v1253_v51 = vld [vmem:[%s3406_s3 + $0x8] sm:$0xff]  ;;  %v986_v10 = vmul.f32 %v2471_v3, %v2352_v41 }
  0x2d   : > { %1966 = vmatprep.subr.mxu0 %v1255_v46  ;;  %2034 = vmatprep.subr.mxu1 %v1255_v46  ;;  %v701_v5 = vmul.f32 %v2474_v7, %v2324_v27  ;;  %v1033_v11 = vadd.f32 %v1001_v15, %v933_v1  ;;  %v532_v17 = vadd.f32 %v500_v61, %v432_v4 }
  0x2e   : > { %1967 = vmatpush3.msra.mxu0 %v1255_v46  ;;  %2050 = vmatpush3.msra.mxu1 %v1255_v46  ;;  %v1156_v9 = vadd.f32 %v2460_v54, %v1117_v60  ;;  %v817_v14 = vadd.f32 %v785_v39, %v717_v2  ;;  %v1086_v28 = vmul.f32 %v2332_v29, %v2485_v16  ;;  %v2517_v60 = vld [vmem:[%s2303_s8 + $0xfa] sm:$0xff] }
  0x2f   : > { %1968 = vmatprep.subr.mxu0 %v1254_v56  ;;  %2035 = vmatprep.subr.mxu1 %v1254_v56  ;;  %v801_v15 = vmul.f32 %v2488_v21, %v2338_v32  ;;  %v902_v33 = vmul.f32 %v2491_v22, %v2342_v35  ;;  %v1133_v36 = vadd.f32 %v1101_v30, %v1033_v11  ;;  %v2529_v11 = vld [vmem:[%s2303_s8 + $0x48] sm:$0xff] }
  0x30   : > { %1969 = vmatpush3.msra.mxu0 %v1254_v56  ;;  %2051 = vmatpush3.msra.mxu1 %v1254_v56  ;;  %v1188_v25 = vmax.f32 %v1156_v9, 0.0  ;;  %v918_v37 = vadd.f32 %v886_v52, %v817_v14  ;;  %v633_v38 = vadd.f32 %v601_v62, %v532_v17  ;;  %v285_v43 = vmul.f32 %v2322_v26, %v2305_v12  ;;  %v2532_v14 = vld [vmem:[%s2303_s8 + $0x49] sm:$0xff] }
  0x31   : > { %1970 = vmatprep.subr.mxu0 %v1253_v51  ;;  %2036 = vmatprep.subr.mxu1 %v1253_v51  ;;  %v385_v46 = vmul.f32 %v2336_v31, %v2307_v13  ;;  %v485_v48 = vmul.f32 %v2350_v40, %v2312_v19  ;;  %v1172_v30 = vadd.f32 %v2460_v54, %v1133_v36 }
  0x32   : > { %1971 = vmatpush3.msra.mxu0 %v1253_v51  ;;  %2052 = vmatpush3.msra.mxu1 %v1253_v51  ;;  %v1220_v39 = vmin.f32 %v1188_v25, 6.0  ;;  %v1018_v53 = vadd.f32 %v986_v10, %v918_v37  ;;  %v733_v52 = vadd.f32 %v701_v5, %v633_v38  ;;  %v586_v26 = vmul.f32 %v2370_v49, %v2314_v20 }
  0x33   : > { %1972 = vmatprep.subr.mxu0 %v1252_v24  ;;  %2037 = vmatprep.subr.mxu1 %v1252_v24  ;;  %v417_v58 = vadd.f32 %v385_v46, %v285_v43  ;;  %v1204_v31 = vmax.f32 %v1172_v30, 0.0  ;;  %v1002_v56 = vmul.f32 %v2510_v55, %v2352_v41  ;;  %v1102_v61 = vmul.f32 %v2332_v29, %v2517_v60 }
  0x34   : > { %1973 = vmatpush3.msra.mxu0 %v1252_v24  ;;  %2053 = vmatpush3.msra.mxu1 %v1252_v24  ;;  %v1118_v40 = vadd.f32 %v1086_v28, %v1018_v53  ;;  %v833_v59 = vadd.f32 %v801_v15, %v733_v52  ;;  %v686_v1 = vmul.f32 %v2373_v50, %v2324_v27  ;;  %v2554_v53 = vld [vmem:[%s2303_s8 + $0x108] sm:$0xff] }
  0x35   : > { %1974 = vmatprep.mubr.f32.mxu0 %v1220_v39  ;;  %v517_v62 = vadd.f32 %v485_v48, %v417_v58  ;;  %v1236_v2 = vmin.f32 %v1204_v31, 6.0  ;;  %v301_v9 = vmul.f32 %v2364_v47, %v2305_v12  ;;  %v786_v5 = vmul.f32 %v2360_v45, %v2338_v32  ;;  %v2557_v52 = vld [vmem:[%s2303_s8 + $0x109] sm:$0xff] }
  0x36   : > { %v1157_v4 = vadd.f32 %v2460_v54, %v1118_v40  ;;  %v934_v51 = vadd.f32 %v902_v33, %v833_v59  ;;  %v401_v17 = vmul.f32 %v2386_v57, %v2307_v13  ;;  %v501_v24 = vmul.f32 %v2395_v63, %v2312_v19  ;;  %v2543_v33 = vld [vmem:[%s2303_s8 + $0x4a] sm:$0xff] }
  0x37   : > { %v618_v10 = vadd.f32 %v586_v26, %v517_v62  ;;  %1998 = vmatprep.mubr.f32.mxu1 %v1236_v2  ;;  %v887_v47 = vmul.f32 %v2529_v11, %v2342_v35  ;;  %v987_v15 = vmul.f32 %v2532_v14, %v2352_v41  ;;  %v1087_v57 = vmul.f32 %v2332_v29, %v2543_v33  ;;  %v2571_v62 = vld [vmem:[%s2303_s8 + $0x10a] sm:$0xff] }
  0x38   : > { %v1189_v25 = vmax.f32 %v1157_v4, 0.0  ;;  %v1034_v28 = vadd.f32 %v1002_v56, %v934_v51  ;;  %v433_v37 = vadd.f32 %v401_v17, %v301_v9  ;;  %v602_v63 = vmul.f32 %v2398_v0, %v2314_v20 }
  0x39   : > { %v718_v36 = vadd.f32 %v686_v1, %v618_v10  ;;  %v702_v43 = vmul.f32 %v2412_v8, %v2324_v27  ;;  %v286_v46 = vmul.f32 %v2409_v6, %v2305_v12  ;;  %v386_v58 = vmul.f32 %v2428_v23, %v2307_v13 }
  0x3a   : > { %v1221_v38 = vmin.f32 %v1189_v25, 6.0  ;;  %v1134_v39 = vadd.f32 %v1102_v61, %v1034_v28  ;;  %v533_v30 = vadd.f32 %v501_v24, %v433_v37  ;;  %v486_v26 = vmul.f32 %v2439_v34, %v2312_v19 }
  0x3b   : > { %v818_v48 = vadd.f32 %v786_v5, %v718_v36  ;;  %v802_v40 = vmul.f32 %v2423_v18, %v2338_v32  ;;  %v903_v6 = vmul.f32 %v2554_v53, %v2342_v35  ;;  %v1003_v59 = vmul.f32 %v2557_v52, %v2352_v41 }
  0x3c   : > { %1975 = vmatmul.mubr.f32.vlgmr.msra.gmra.mxu0 %v1221_v38  ;;  %v1173_v31 = vadd.f32 %v2460_v54, %v1134_v39  ;;  %v634_v61 = vadd.f32 %v602_v63, %v533_v30  ;;  %v418_v23 = vadd.f32 %v386_v58, %v286_v46  ;;  %v587_v34 = vmul.f32 %v2445_v42, %v2314_v20  ;;  %v2596_v38 = vld [vmem:[%s2303_s8 + $0x52] sm:$0xff] }
  0x3d   : > { %v919_v56 = vadd.f32 %v887_v47, %v818_v48  ;;  %v1103_v2 = vmul.f32 %v2332_v29, %v2571_v62  ;;  %v687_v4 = vmul.f32 %v2471_v3, %v2324_v27  ;;  %v302_v51 = vmul.f32 %v2449_v44, %v2305_v12  ;;  %v2590_v44 = vld [vmem:[%s2303_s8 + $0x50] sm:$0xff] }
  0x3e   : > { %v1205_v1 = vmax.f32 %v1173_v31, 0.0  ;;  %v734_v10 = vadd.f32 %v702_v43, %v634_v61  ;;  %v518_v5 = vadd.f32 %v486_v26, %v418_v23  ;;  %v402_v17 = vmul.f32 %v2474_v7, %v2307_v13 }
  0x3f   : > { %v1019_v9 = vadd.f32 %v987_v15, %v919_v56  ;;  %v787_v25 = vmul.f32 %v2485_v16, %v2338_v32  ;;  %v502_v28 = vmul.f32 %v2488_v21, %v2312_v19  ;;  %v603_v47 = vmul.f32 %v2491_v22, %v2314_v20  ;;  %v2593_v15 = vld [vmem:[%s2303_s8 + $0x51] sm:$0xff] }
  0x40   : > { %v1237_v24 = vmin.f32 %v1205_v1, 6.0  ;;  %v834_v37 = vadd.f32 %v802_v40, %v734_v10  ;;  %v619_v63 = vadd.f32 %v587_v34, %v518_v5  ;;  %v434_v7 = vadd.f32 %v402_v17, %v302_v51  ;;  %v2628_v17 = vld [vmem:[%s2303_s8 + $0x112] sm:$0xff] }
  0x41   : > { %v1119_v36 = vadd.f32 %v1087_v57, %v1019_v9  ;;  %v888_v39 = vmul.f32 %v2590_v44, %v2342_v35  ;;  %v988_v21 = vmul.f32 %v2593_v15, %v2352_v41  ;;  %v1088_v57 = vmul.f32 %v2332_v29, %v2596_v38 }
  0x42   : > { %1999 = vmatmul.mubr.f32.vlgmr.msra.gmra.mxu1 %v1237_v24  ;;  %v703_v43 = vmul.f32 %v2510_v55, %v2324_v27  ;;  %v935_v48 = vadd.f32 %v903_v6, %v834_v37  ;;  %v719_v30 = vadd.f32 %v687_v4, %v619_v63  ;;  %v534_v58 = vadd.f32 %v502_v28, %v434_v7  ;;  %v2616_v6 = vld [vmem:[%s2303_s8 + $0x110] sm:$0xff] }
  0x43   : > { %v1158_v46 = vadd.f32 %v2460_v54, %v1119_v36  ;;  %v803_v26 = vmul.f32 %v2517_v60, %v2338_v32  ;;  %v287_v31 = vmul.f32 %v2370_v49, %v2305_v12  ;;  %v387_v40 = vmul.f32 %v2373_v50, %v2307_v13  ;;  %v2619_v4 = vld [vmem:[%s2303_s8 + $0x111] sm:$0xff] }
  0x44   : > { %v487_v56 = vmul.f32 %v2360_v45, %v2312_v19  ;;  %v1035_v23 = vadd.f32 %v1003_v59, %v935_v48  ;;  %v819_v34 = vadd.f32 %v787_v25, %v719_v30  ;;  %v635_v1 = vadd.f32 %v603_v47, %v534_v58  ;;  %v2646_v58 = vld [vmem:[%s2303_s8 + $0x60] sm:$0xff] }
  0x45   : > { %v1190_v61 = vmax.f32 %v1158_v46, 0.0  ;;  %v904_v51 = vmul.f32 %v2616_v6, %v2342_v35  ;;  %v1004_v49 = vmul.f32 %v2619_v4, %v2352_v41  ;;  %v419_v9 = vadd.f32 %v387_v40, %v287_v31 }
  0x46   : > { %v588_v50 = vmul.f32 %v2529_v11, %v2314_v20  ;;  %v1135_v45 = vadd.f32 %v1103_v2, %v1035_v23  ;;  %v920_v5 = vadd.f32 %v888_v39, %v819_v34  ;;  %v735_v59 = vadd.f32 %v703_v43, %v635_v1 }
  0x47   : > { %v1222_v10 = vmin.f32 %v1190_v61, 6.0  ;;  %v1104_v24 = vmul.f32 %v2332_v29, %v2628_v17  ;;  %v519_v25 = vadd.f32 %v487_v56, %v419_v9  ;;  %v688_v28 = vmul.f32 %v2532_v14, %v2324_v27 }
  0x48   : > { %v303_v47 = vmul.f32 %v2398_v0, %v2305_v12  ;;  %v1174_v36 = vadd.f32 %v2460_v54, %v1135_v45  ;;  %v1020_v2 = vadd.f32 %v988_v21, %v920_v5  ;;  %v835_v37 = vadd.f32 %v803_v26, %v735_v59  ;;  %v2649_v21 = vld [vmem:[%s2303_s8 + $0x61] sm:$0xff] }
  0x49   : > { %1977 = vmatprep.mubr.f32.mxu0 %v1222_v10  ;;  %v403_v63 = vmul.f32 %v2412_v8, %v2307_v13  ;;  %v620_v7 = vadd.f32 %v588_v50, %v519_v25  ;;  %v788_v39 = vmul.f32 %v2543_v33, %v2338_v32  ;;  %v503_v43 = vmul.f32 %v2423_v18, %v2312_v19  ;;  %v2665_v45 = vld [vmem:[%s2303_s8 + $0x62] sm:$0xff] }
  0x4a   : > { %v604_v46 = vmul.f32 %v2554_v53, %v2314_v20  ;;  %v1206_v48 = vmax.f32 %v1174_v36, 0.0  ;;  %v1120_v0 = vadd.f32 %v1088_v57, %v1020_v2  ;;  %v936_v30 = vadd.f32 %v904_v51, %v835_v37 }
  0x4b   : > { %v435_v26 = vadd.f32 %v403_v63, %v303_v47  ;;  %v720_v8 = vadd.f32 %v688_v28, %v620_v7  ;;  %v889_v31 = vmul.f32 %v2646_v58, %v2342_v35  ;;  %v989_v40 = vmul.f32 %v2649_v21, %v2352_v41  ;;  %v2672_v28 = vld [vmem:[%s2303_s8 + $0x120] sm:$0xff] }
  0x4c   : > { %v704_v18 = vmul.f32 %v2557_v52, %v2324_v27  ;;  %v1238_v56 = vmin.f32 %v1206_v48, 6.0  ;;  %v1159_v57 = vadd.f32 %v2460_v54, %v1120_v0  ;;  %v1036_v61 = vadd.f32 %v1004_v49, %v936_v30 }
  0x4d   : > { %v535_v23 = vadd.f32 %v503_v43, %v435_v26  ;;  %v820_v34 = vadd.f32 %v788_v39, %v720_v8  ;;  %v804_v1 = vmul.f32 %v2571_v62, %v2338_v32  ;;  %v288_v51 = vmul.f32 %v2445_v42, %v2305_v12  ;;  %v2691_v26 = vld [vmem:[%s2303_s8 + $0x122] sm:$0xff] }
  0x4e   : > { %v388_v9 = vmul.f32 %v2471_v3, %v2307_v13  ;;  %2001 = vmatprep.mubr.f32.mxu1 %v1238_v56  ;;  %v1191_v50 = vmax.f32 %v1159_v57, 0.0  ;;  %v1136_v10 = vadd.f32 %v1104_v24, %v1036_v61  ;;  %v488_v49 = vmul.f32 %v2485_v16, %v2312_v19  ;;  %v2680_v16 = vld [vmem:[%s2303_s8 + $0x121] sm:$0xff] }
  0x4f   : > { %v636_v5 = vadd.f32 %v604_v46, %v535_v23  ;;  %v921_v59 = vadd.f32 %v889_v31, %v820_v34  ;;  %v1089_v25 = vmul.f32 %v2332_v29, %v2665_v45  ;;  %v589_v3 = vmul.f32 %v2590_v44, %v2314_v20  ;;  %v2694_v31 = vld [vmem:[%s2303_s8 + $0x68] sm:$0xff] }
  0x50   : > { %v420_v42 = vadd.f32 %v388_v9, %v288_v51  ;;  %v1223_v47 = vmin.f32 %v1191_v50, 6.0  ;;  %v1175_v24 = vadd.f32 %v2460_v54, %v1136_v10  ;;  %v905_v2 = vmul.f32 %v2672_v28, %v2342_v35  ;;  %v2709_v51 = vld [vmem:[%s2303_s8 + $0x6a] sm:$0xff] }
  0x51   : > { %v736_v36 = vadd.f32 %v704_v18, %v636_v5  ;;  %v1021_v37 = vadd.f32 %v989_v40, %v921_v59  ;;  %v1005_v63 = vmul.f32 %v2680_v16, %v2352_v41  ;;  %v689_v39 = vmul.f32 %v2593_v15, %v2324_v27 }
  0x52   : > { %v520_v7 = vadd.f32 %v488_v49, %v420_v42  ;;  %1978 = vmatmul.mubr.f32.gmra.mxu0 %v1223_v47  ;;  %v1207_v43 = vmax.f32 %v1175_v24, 0.0  ;;  %v789_v48 = vmul.f32 %v2596_v38, %v2338_v32  ;;  %v304_v0 = vmul.f32 %v2491_v22, %v2305_v12  ;;  %v2724_v24 = vld [vmem:[%s2303_s8 + $0x128] sm:$0xff] }
  0x53   : > { %v836_v46 = vadd.f32 %v804_v1, %v736_v36  ;;  %v1121_v30 = vadd.f32 %v1089_v25, %v1021_v37  ;;  %v404_v40 = vmul.f32 %v2510_v55, %v2307_v13  ;;  %v504_v18 = vmul.f32 %v2517_v60, %v2312_v19  ;;  %v2706_v1 = vld [vmem:[%s2303_s8 + $0x69] sm:$0xff] }
  0x54   : > { %v621_v8 = vadd.f32 %v589_v3, %v520_v7  ;;  %v1239_v56 = vmin.f32 %v1207_v43, 6.0  ;;  %v1105_v61 = vmul.f32 %v2332_v29, %v2691_v26  ;;  %v890_v22 = vmul.f32 %v2694_v31, %v2342_v35  ;;  %v2733_v43 = vld [vmem:[%s2303_s8 + $0x129] sm:$0xff] }
  0x55   : > { %v937_v57 = vadd.f32 %v905_v2, %v836_v46  ;;  %v1160_v23 = vadd.f32 %v2460_v54, %v1121_v30  ;;  %v436_v55 = vadd.f32 %v404_v40, %v304_v0  ;;  %v605_v60 = vmul.f32 %v2616_v6, %v2314_v20 }
  0x56   : > { %v721_v34 = vadd.f32 %v689_v39, %v621_v8  ;;  %2002 = vmatmul.mubr.f32.gmra.mxu1 %v1239_v56  ;;  %v990_v50 = vmul.f32 %v2706_v1, %v2352_v41  ;;  %v1090_v10 = vmul.f32 %v2332_v29, %v2709_v51  ;;  %v705_v5 = vmul.f32 %v2619_v4, %v2324_v27 }
  0x57   : > { %v1037_v9 = vadd.f32 %v1005_v63, %v937_v57  ;;  %v1192_v49 = vmax.f32 %v1160_v23, 0.0  ;;  %v536_v25 = vadd.f32 %v504_v18, %v436_v55  ;;  %v289_v42 = vmul.f32 %v2529_v11, %v2305_v12 }
  0x58   : > { %v821_v59 = vadd.f32 %v789_v48, %v721_v34  ;;  %v805_v47 = vmul.f32 %v2628_v17, %v2338_v32  ;;  %v389_v36 = vmul.f32 %v2532_v14, %v2307_v13  ;;  %v489_v2 = vmul.f32 %v2543_v33, %v2312_v19  ;;  %v2739_v48 = vld [vmem:[%s2303_s8 + $0x12a] sm:$0xff] }
  0x59   : > { %v1137_v3 = vadd.f32 %v1105_v61, %v1037_v9  ;;  %v1224_v37 = vmin.f32 %v1192_v49, 6.0  ;;  %v637_v7 = vadd.f32 %v605_v60, %v536_v25  ;;  %v906_v39 = vmul.f32 %v2724_v24, %v2342_v35 }
  0x5a   : > { %v922_v63 = vadd.f32 %v890_v22, %v821_v59  ;;  %v1006_v46 = vmul.f32 %v2733_v43, %v2352_v41  ;;  %v421_v0 = vadd.f32 %v389_v36, %v289_v42  ;;  %v590_v14 = vmul.f32 %v2646_v58, %v2314_v20 }
  0x5b   : > { %v1176_v11 = vadd.f32 %v2460_v54, %v1137_v3  ;;  %1980 = vmatprep.mubr.f32.mxu0 %v1224_v37  ;;  %v737_v30 = vadd.f32 %v705_v5, %v637_v7  ;;  %v1106_v8 = vmul.f32 %v2332_v29, %v2739_v48  ;;  %v690_v40 = vmul.f32 %v2649_v21, %v2324_v27  ;;  %v2759_v5 = vld [vmem:[%s2303_s8 + $0x79] sm:$0xff] }
  0x5c   : > { %v1022_v33 = vadd.f32 %v990_v50, %v922_v63  ;;  %v521_v56 = vadd.f32 %v489_v2, %v421_v0  ;;  %v305_v57 = vmul.f32 %v2554_v53, %v2305_v12  ;;  %v405_v61 = vmul.f32 %v2557_v52, %v2307_v13  ;;  %v2756_v50 = vld [vmem:[%s2303_s8 + $0x78] sm:$0xff] }
  0x5d   : > { %v1208_v18 = vmax.f32 %v1176_v11, 0.0  ;;  %v837_v23 = vadd.f32 %v805_v47, %v737_v30  ;;  %v790_v34 = vmul.f32 %v2665_v45, %v2338_v32  ;;  %v505_v55 = vmul.f32 %v2571_v62, %v2312_v19  ;;  %v2769_v62 = vld [vmem:[%s2303_s8 + $0x7a] sm:$0xff] }
  0x5e   : > { %v1122_v22 = vadd.f32 %v1090_v10, %v1022_v33  ;;  %v622_v9 = vadd.f32 %v590_v14, %v521_v56  ;;  %v437_v49 = vadd.f32 %v405_v61, %v305_v57  ;;  %v606_v53 = vmul.f32 %v2672_v28, %v2314_v20 }
  0x5f   : > { %v1240_v60 = vmin.f32 %v1208_v18, 6.0  ;;  %v938_v10 = vadd.f32 %v906_v39, %v837_v23  ;;  %v891_v59 = vmul.f32 %v2756_v50, %v2342_v35  ;;  %v991_v25 = vmul.f32 %v2759_v5, %v2352_v41 }
  0x60   : > { %v1161_v52 = vadd.f32 %v2460_v54, %v1122_v22  ;;  %v722_v42 = vadd.f32 %v690_v40, %v622_v9  ;;  %v1091_v3 = vmul.f32 %v2332_v29, %v2769_v62  ;;  %v537_v47 = vadd.f32 %v505_v55, %v437_v49  ;;  %v2784_v40 = vld [vmem:[%s2303_s8 + $0x138] sm:$0xff] }
  0x61   : > { %2004 = vmatprep.mubr.f32.mxu1 %v1240_v60  ;;  %v706_v36 = vmul.f32 %v2680_v16, %v2324_v27  ;;  %v1038_v37 = vadd.f32 %v1006_v46, %v938_v10  ;;  %v290_v63 = vmul.f32 %v2590_v44, %v2305_v12  ;;  %v390_v7 = vmul.f32 %v2593_v15, %v2307_v13  ;;  %v2787_v46 = vld [vmem:[%s2303_s8 + $0x139] sm:$0xff] }
  0x62   : > { %v1193_v2 = vmax.f32 %v1161_v52, 0.0  ;;  %v822_v39 = vadd.f32 %v790_v34, %v722_v42  ;;  %v638_v11 = vadd.f32 %v606_v53, %v537_v47  ;;  %v806_v0 = vmul.f32 %v2691_v26, %v2338_v32  ;;  %v2796_v22 = vld [vmem:[%s2303_s8 + $0x13a] sm:$0xff] }
  0x63   : > { %v490_v14 = vmul.f32 %v2596_v38, %v2312_v19  ;;  %v1138_v30 = vadd.f32 %v1106_v8, %v1038_v37  ;;  %v422_v18 = vadd.f32 %v390_v7, %v290_v63  ;;  %v591_v44 = vmul.f32 %v2694_v31, %v2314_v20 }
  0x64   : > { %v1225_v33 = vmin.f32 %v1193_v2, 6.0  ;;  %v923_v56 = vadd.f32 %v891_v59, %v822_v39  ;;  %v738_v15 = vadd.f32 %v706_v36, %v638_v11  ;;  %v907_v57 = vmul.f32 %v2784_v40, %v2342_v35  ;;  %v2812_v36 = vld [vmem:[%s2303_s8 + $0x80] sm:$0xff] }
  0x65   : > { %v1007_v61 = vmul.f32 %v2787_v46, %v2352_v41  ;;  %v1177_v38 = vadd.f32 %v2460_v54, %v1138_v30  ;;  %v1107_v8 = vmul.f32 %v2332_v29, %v2796_v22  ;;  %v522_v23 = vadd.f32 %v490_v14, %v422_v18 }
  0x66   : > { %1981 = vmatmul.mubr.f32.gmra.mxu0 %v1225_v33  ;;  %v691_v34 = vmul.f32 %v2706_v1, %v2324_v27  ;;  %v1023_v55 = vadd.f32 %v991_v25, %v923_v56  ;;  %v838_v60 = vadd.f32 %v806_v0, %v738_v15  ;;  %v306_v9 = vmul.f32 %v2616_v6, %v2305_v12  ;;  %v2815_v25 = vld [vmem:[%s2303_s8 + $0x81] sm:$0xff] }
  0x67   : > { %v406_v49 = vmul.f32 %v2619_v4, %v2307_v13  ;;  %v1209_v53 = vmax.f32 %v1177_v38, 0.0  ;;  %v623_v52 = vadd.f32 %v591_v44, %v522_v23  ;;  %v791_v10 = vmul.f32 %v2709_v51, %v2338_v32  ;;  %v2833_v56 = vld [vmem:[%s2303_s8 + $0x82] sm:$0xff] }
  0x68   : > { %v506_v59 = vmul.f32 %v2628_v17, %v2312_v19  ;;  %v1123_v42 = vadd.f32 %v1091_v3, %v1023_v55  ;;  %v939_v47 = vadd.f32 %v907_v57, %v838_v60  ;;  %v607_v6 = vmul.f32 %v2724_v24, %v2314_v20  ;;  %v2840_v23 = vld [vmem:[%s2303_s8 + $0x140] sm:$0xff] }
  0x69   : > { %v438_v2 = vadd.f32 %v406_v49, %v306_v9  ;;  %v1241_v4 = vmin.f32 %v1209_v53, 6.0  ;;  %v723_v37 = vadd.f32 %v691_v34, %v623_v52  ;;  %v892_v63 = vmul.f32 %v2812_v36, %v2342_v35 }
  0x6a   : > { %v992_v7 = vmul.f32 %v2815_v25, %v2352_v41  ;;  %v1162_v17 = vadd.f32 %v2460_v54, %v1123_v42  ;;  %v1039_v3 = vadd.f32 %v1007_v61, %v939_v47  ;;  %v707_v11 = vmul.f32 %v2733_v43, %v2324_v27 }
  0x6b   : > { %v538_v39 = vadd.f32 %v506_v59, %v438_v2  ;;  %2005 = vmatmul.mubr.f32.gmra.mxu1 %v1241_v4  ;;  %v823_v0 = vadd.f32 %v791_v10, %v723_v37  ;;  %v807_v14 = vmul.f32 %v2739_v48, %v2338_v32  ;;  %v291_v33 = vmul.f32 %v2646_v58, %v2305_v12  ;;  %v2862_v37 = vld [vmem:[%s2303_s8 + $0x90] sm:$0xff] }
  0x6c   : > { %v391_v30 = vmul.f32 %v2649_v21, %v2307_v13  ;;  %v1194_v18 = vmax.f32 %v1162_v17, 0.0  ;;  %v1139_v44 = vadd.f32 %v1107_v8, %v1039_v3  ;;  %v491_v57 = vmul.f32 %v2665_v45, %v2312_v19  ;;  %v2848_v45 = vld [vmem:[%s2303_s8 + $0x141] sm:$0xff] }
  0x6d   : > { %v639_v15 = vadd.f32 %v607_v6, %v538_v39  ;;  %v924_v61 = vadd.f32 %v892_v63, %v823_v0  ;;  %v1092_v38 = vmul.f32 %v2332_v29, %v2833_v56  ;;  %v592_v58 = vmul.f32 %v2756_v50, %v2314_v20  ;;  %v2859_v6 = vld [vmem:[%s2303_s8 + $0x142] sm:$0xff] }
  0x6e   : > { %v423_v34 = vadd.f32 %v391_v30, %v291_v33  ;;  %v1226_v21 = vmin.f32 %v1194_v18, 6.0  ;;  %v1178_v8 = vadd.f32 %v2460_v54, %v1139_v44  ;;  %v908_v60 = vmul.f32 %v2840_v23, %v2342_v35  ;;  %v2877_v33 = vld [vmem:[%s2303_s8 + $0x92] sm:$0xff] }
  0x6f   : > { %v739_v55 = vadd.f32 %v707_v11, %v639_v15  ;;  %v1024_v9 = vadd.f32 %v992_v7, %v924_v61  ;;  %v1008_v49 = vmul.f32 %v2848_v45, %v2352_v41  ;;  %v692_v52 = vmul.f32 %v2759_v5, %v2324_v27 }
  0x70   : > { %v523_v53 = vadd.f32 %v491_v57, %v423_v34  ;;  %1983 = vmatprep.mubr.f32.mxu0 %v1226_v21  ;;  %v1210_v10 = vmax.f32 %v1178_v8, 0.0  ;;  %v792_v42 = vmul.f32 %v2769_v62, %v2338_v32  ;;  %v307_v47 = vmul.f32 %v2672_v28, %v2305_v12  ;;  %v2892_v8 = vld [vmem:[%s2303_s8 + $0x150] sm:$0xff] }
  0x71   : > { %v839_v59 = vadd.f32 %v807_v14, %v739_v55  ;;  %v1124_v2 = vadd.f32 %v1092_v38, %v1024_v9  ;;  %v407_v63 = vmul.f32 %v2680_v16, %v2307_v13  ;;  %v507_v7 = vmul.f32 %v2691_v26, %v2312_v19  ;;  %v2874_v14 = vld [vmem:[%s2303_s8 + $0x91] sm:$0xff] }
  0x72   : > { %v624_v4 = vadd.f32 %v592_v58, %v523_v53  ;;  %v1242_v17 = vmin.f32 %v1210_v10, 6.0  ;;  %v1108_v39 = vmul.f32 %v2332_v29, %v2859_v6  ;;  %v893_v28 = vmul.f32 %v2862_v37, %v2342_v35  ;;  %v2901_v10 = vld [vmem:[%s2303_s8 + $0x151] sm:$0xff] }
  0x73   : > { %v940_v3 = vadd.f32 %v908_v60, %v839_v59  ;;  %v1163_v11 = vadd.f32 %v2460_v54, %v1124_v2  ;;  %v439_v16 = vadd.f32 %v407_v63, %v307_v47  ;;  %v608_v26 = vmul.f32 %v2784_v40, %v2314_v20 }
  0x74   : > { %v724_v0 = vadd.f32 %v692_v52, %v624_v4  ;;  %2007 = vmatprep.mubr.f32.mxu1 %v1242_v17  ;;  %v993_v18 = vmul.f32 %v2874_v14, %v2352_v41  ;;  %v1093_v44 = vmul.f32 %v2332_v29, %v2877_v33  ;;  %v708_v15 = vmul.f32 %v2787_v46, %v2324_v27 }
  0x75   : > { %v1040_v30 = vadd.f32 %v1008_v49, %v940_v3  ;;  %v1195_v57 = vmax.f32 %v1163_v11, 0.0  ;;  %v539_v38 = vadd.f32 %v507_v7, %v439_v16  ;;  %v292_v34 = vmul.f32 %v2694_v31, %v2305_v12 }
  0x76   : > { %v824_v61 = vadd.f32 %v792_v42, %v724_v0  ;;  %v808_v21 = vmul.f32 %v2796_v22, %v2338_v32  ;;  %v392_v55 = vmul.f32 %v2706_v1, %v2307_v13  ;;  %v492_v60 = vmul.f32 %v2709_v51, %v2312_v19  ;;  %v2907_v42 = vld [vmem:[%s2303_s8 + $0x152] sm:$0xff] }
  0x77   : > { %v1140_v58 = vadd.f32 %v1108_v39, %v1040_v30  ;;  %v1227_v9 = vmin.f32 %v1195_v57, 6.0  ;;  %v640_v53 = vadd.f32 %v608_v26, %v539_v38  ;;  %v909_v52 = vmul.f32 %v2892_v8, %v2342_v35  ;;  %v2924_v30 = vld [vmem:[%s2303_s8 + $0x98] sm:$0xff] }
  0x78   : > { %v925_v49 = vadd.f32 %v893_v28, %v824_v61  ;;  %v1009_v59 = vmul.f32 %v2901_v10, %v2352_v41  ;;  %v424_v47 = vadd.f32 %v392_v55, %v292_v34  ;;  %v593_v1 = vmul.f32 %v2812_v36, %v2314_v20  ;;  %v2942_v34 = vld [vmem:[%s3404_s1 + $0x8] ss:$0 sm:$0xff] }
  0x79   : > { %v1179_v31 = vadd.f32 %v2460_v54, %v1140_v58  ;;  %1984 = vmatmul.mubr.f32.gmra.mxu0 %v1227_v9  ;;  %v740_v2 = vadd.f32 %v708_v15, %v640_v53  ;;  %v1109_v4 = vmul.f32 %v2332_v29, %v2907_v42  ;;  %v693_v63 = vmul.f32 %v2815_v25, %v2324_v27 }
  0x7a   : > { %v1025_v51 = vadd.f32 %v993_v18, %v925_v49  ;;  %v524_v17 = vadd.f32 %v492_v60, %v424_v47  ;;  %v308_v3 = vmul.f32 %v2724_v24, %v2305_v12  ;;  %v408_v39 = vmul.f32 %v2733_v43, %v2307_v13  ;;  %v2927_v18 = vld [vmem:[%s2303_s8 + $0x99] sm:$0xff] }
  0x7b   : > { %v1211_v7 = vmax.f32 %v1179_v31, 0.0  ;;  %v840_v11 = vadd.f32 %v808_v21, %v740_v2  ;;  %v793_v0 = vmul.f32 %v2833_v56, %v2338_v32  ;;  %v508_v29 = vmul.f32 %v2739_v48, %v2312_v19  ;;  %v2937_v48 = vld [vmem:[%s2303_s8 + $0x9a] sm:$0xff] }
  0x7c   : > { %v1125_v28 = vadd.f32 %v1093_v44, %v1025_v51  ;;  %v625_v26 = vadd.f32 %v593_v1, %v524_v17  ;;  %v440_v15 = vadd.f32 %v408_v39, %v308_v3  ;;  %v609_v24 = vmul.f32 %v2840_v23, %v2314_v20 }
  0x7d   : > { %v1243_v16 = vmin.f32 %v1211_v7, 6.0  ;;  %v941_v44 = vadd.f32 %v909_v52, %v840_v11  ;;  %v894_v57 = vmul.f32 %v2924_v30, %v2342_v35  ;;  %v994_v61 = vmul.f32 %v2927_v18, %v2352_v41 }
  0x7e   : > { %v1164_v43 = vadd.f32 %v2460_v54, %v1125_v28  ;;  %v725_v38 = vadd.f32 %v693_v63, %v625_v26  ;;  %v1094_v58 = vmul.f32 %v2942_v34, %v2937_v48  ;;  %v540_v21 = vadd.f32 %v508_v29, %v440_v15  ;;  %v2957_v63 = vld [vmem:[%s2303_s8 + $0x158] sm:$0xff] }
  0x7f   : > { %2008 = vmatmul.mubr.f32.gmra.mxu1 %v1243_v16  ;;  %v709_v55 = vmul.f32 %v2848_v45, %v2324_v27  ;;  %v1041_v9 = vadd.f32 %v1009_v59, %v941_v44  ;;  %v293_v49 = vmul.f32 %v2756_v50, %v2305_v12  ;;  %v393_v53 = vmul.f32 %v2759_v5, %v2307_v13  ;;  %v2960_v59 = vld [vmem:[%s2303_s8 + $0x159] sm:$0xff] }
  0x80   : > { %v1196_v60 = vmax.f32 %v1164_v43, 0.0  ;;  %v825_v52 = vadd.f32 %v793_v0, %v725_v38  ;;  %v641_v31 = vadd.f32 %v609_v24, %v540_v21  ;;  %v809_v47 = vmul.f32 %v2859_v6, %v2338_v32  ;;  %v2969_v28 = vld [vmem:[%s2303_s8 + $0x15a] sm:$0xff] }
  0x81   : > { %v493_v1 = vmul.f32 %v2769_v62, %v2312_v19  ;;  %v1141_v2 = vadd.f32 %v1109_v4, %v1041_v9  ;;  %v425_v7 = vadd.f32 %v393_v53, %v293_v49  ;;  %v594_v50 = vmul.f32 %v2862_v37, %v2314_v20 }
  0x82   : > { %v1228_v51 = vmin.f32 %v1196_v60, 6.0  ;;  %v926_v17 = vadd.f32 %v894_v57, %v825_v52  ;;  %v741_v5 = vadd.f32 %v709_v55, %v641_v31  ;;  %v910_v3 = vmul.f32 %v2957_v63, %v2342_v35  ;;  %v2985_v55 = vld [vmem:[%s2303_s8 + $0xa8] sm:$0xff] }
  0x83   : > { %v1010_v39 = vmul.f32 %v2960_v59, %v2352_v41  ;;  %v1180_v62 = vadd.f32 %v2460_v54, %v1141_v2  ;;  %v1110_v4 = vmul.f32 %v2942_v34, %v2969_v28  ;;  %v525_v11 = vadd.f32 %v493_v1, %v425_v7 }
  0x84   : > { %1986 = vmatprep.mubr.f32.mxu0 %v1228_v51  ;;  %v694_v0 = vmul.f32 %v2874_v14, %v2324_v27  ;;  %v1026_v29 = vadd.f32 %v994_v61, %v926_v17  ;;  %v841_v16 = vadd.f32 %v809_v47, %v741_v5  ;;  %v309_v26 = vmul.f32 %v2784_v40, %v2305_v12  ;;  %v2988_v61 = vld [vmem:[%s2303_s8 + $0xa9] sm:$0xff] }
  0x85   : > { %v409_v15 = vmul.f32 %v2787_v46, %v2307_v13  ;;  %v1212_v24 = vmax.f32 %v1180_v62, 0.0  ;;  %v626_v43 = vadd.f32 %v594_v50, %v525_v11  ;;  %v794_v44 = vmul.f32 %v2877_v33, %v2338_v32  ;;  %v3006_v17 = vld [vmem:[%s2303_s8 + $0xaa] sm:$0xff] }
  0x86   : > { %v509_v57 = vmul.f32 %v2796_v22, %v2312_v19  ;;  %v1126_v38 = vadd.f32 %v1094_v58, %v1026_v29  ;;  %v942_v21 = vadd.f32 %v910_v3, %v841_v16  ;;  %v610_v40 = vmul.f32 %v2892_v8, %v2314_v20  ;;  %v3013_v11 = vld [vmem:[%s2303_s8 + $0x168] sm:$0xff] }
  0x87   : > { %v441_v60 = vadd.f32 %v409_v15, %v309_v26  ;;  %v1244_v46 = vmin.f32 %v1212_v24, 6.0  ;;  %v726_v9 = vadd.f32 %v694_v0, %v626_v43  ;;  %v895_v49 = vmul.f32 %v2985_v55, %v2342_v35 }
  0x88   : > { %v995_v53 = vmul.f32 %v2988_v61, %v2352_v41  ;;  %v1165_v22 = vadd.f32 %v2460_v54, %v1126_v38  ;;  %v1042_v58 = vadd.f32 %v1010_v39, %v942_v21  ;;  %v710_v31 = vmul.f32 %v2901_v10, %v2324_v27 }
  0x89   : > { %v541_v52 = vadd.f32 %v509_v57, %v441_v60  ;;  %2010 = vmatprep.mubr.f32.mxu1 %v1244_v46  ;;  %v826_v47 = vadd.f32 %v794_v44, %v726_v9  ;;  %v810_v1 = vmul.f32 %v2907_v42, %v2338_v32  ;;  %v294_v51 = vmul.f32 %v2812_v36, %v2305_v12  ;;  %v3035_v9 = vld [vmem:[%s2303_s8 + $0xb0] sm:$0xff] }
  0x8a   : > { %v394_v2 = vmul.f32 %v2815_v25, %v2307_v13  ;;  %v1197_v7 = vmax.f32 %v1165_v22, 0.0  ;;  %v1142_v50 = vadd.f32 %v1110_v4, %v1042_v58  ;;  %v494_v3 = vmul.f32 %v2833_v56, %v2312_v19  ;;  %v3021_v56 = vld [vmem:[%s2303_s8 + $0x169] sm:$0xff] }
  0x8b   : > { %v642_v5 = vadd.f32 %v610_v40, %v541_v52  ;;  %v927_v39 = vadd.f32 %v895_v49, %v826_v47  ;;  %v1095_v62 = vmul.f32 %v2942_v34, %v3006_v17  ;;  %v595_v36 = vmul.f32 %v2924_v30, %v2314_v20  ;;  %v3032_v40 = vld [vmem:[%s2303_s8 + $0x16a] sm:$0xff] }
  0x8c   : > { %v426_v0 = vadd.f32 %v394_v2, %v294_v51  ;;  %v1229_v25 = vmin.f32 %v1197_v7, 6.0  ;;  %v1181_v4 = vadd.f32 %v2460_v54, %v1142_v50  ;;  %v911_v16 = vmul.f32 %v3013_v11, %v2342_v35  ;;  %v3050_v51 = vld [vmem:[%s2303_s8 + $0xb2] sm:$0xff] }
  0x8d   : > { %v742_v29 = vadd.f32 %v710_v31, %v642_v5  ;;  %v1027_v26 = vadd.f32 %v995_v53, %v927_v39  ;;  %v1011_v15 = vmul.f32 %v3021_v56, %v2352_v41  ;;  %v695_v43 = vmul.f32 %v2927_v18, %v2324_v27 }
  0x8e   : > { %v526_v24 = vadd.f32 %v494_v3, %v426_v0  ;;  %1987 = vmatmul.mubr.f32.gmra.mxu0 %v1229_v25  ;;  %v1213_v44 = vmax.f32 %v1181_v4, 0.0  ;;  %v795_v38 = vmul.f32 %v2937_v48, %v2338_v32  ;;  %v310_v21 = vmul.f32 %v2840_v23, %v2305_v12  ;;  %v3065_v25 = vld [vmem:[%s2303_s8 + $0x170] sm:$0xff] }
  0x8f   : > { %v842_v57 = vadd.f32 %v810_v1, %v742_v29  ;;  %v1127_v60 = vadd.f32 %v1095_v62, %v1027_v26  ;;  %v410_v49 = vmul.f32 %v2848_v45, %v2307_v13  ;;  %v510_v53 = vmul.f32 %v2859_v6, %v2312_v19  ;;  %v3047_v1 = vld [vmem:[%s2303_s8 + $0xb1] sm:$0xff] }
  0x90   : > { %v627_v46 = vadd.f32 %v595_v36, %v526_v24  ;;  %v1245_v22 = vmin.f32 %v1213_v44, 6.0  ;;  %v1111_v52 = vmul.f32 %v2942_v34, %v3032_v40  ;;  %v896_v23 = vmul.f32 %v3035_v9, %v2342_v35 }
  0x91   : > { %v943_v58 = vadd.f32 %v911_v16, %v842_v57  ;;  %v1166_v31 = vadd.f32 %v2460_v54, %v1127_v60  ;;  %v442_v45 = vadd.f32 %v410_v49, %v310_v21  ;;  %v611_v6 = vmul.f32 %v2957_v63, %v2314_v20  ;;  %v3085_v57 = vld [vmem:[%s2303_s8 + $0x172] sm:$0xff] }
  0x92   : > { %v727_v47 = vadd.f32 %v695_v43, %v627_v46  ;;  %2011 = vmatmul.mubr.f32.gmra.mxu1 %v1245_v22  ;;  %v996_v7 = vmul.f32 %v3047_v1, %v2352_v41  ;;  %v1096_v50 = vmul.f32 %v2942_v34, %v3050_v51  ;;  %v711_v54 = vmul.f32 %v2960_v59, %v2324_v27  ;;  %v3074_v43 = vld [vmem:[%s2303_s8 + $0x171] sm:$0xff] }
  0x93   : > { %v1043_v2 = vadd.f32 %v1011_v15, %v943_v58  ;;  %v1198_v5 = vmax.f32 %v1166_v31, 0.0  ;;  %v542_v39 = vadd.f32 %v510_v53, %v442_v45  ;;  %v295_v62 = vmul.f32 %v2862_v37, %v2305_v12  ;;  %v3079_v37 = vld [vmem:[%s3405_s2] ss:$0 sm:$0xff] }
  0x94   : > { %v827_v3 = vadd.f32 %v795_v38, %v727_v47  ;;  %v811_v36 = vmul.f32 %v2969_v28, %v2338_v32  ;;  %v395_v4 = vmul.f32 %v2874_v14, %v2307_v13  ;;  %v495_v29 = vmul.f32 %v2877_v33, %v2312_v19 }
  0x95   : > { %v1143_v0 = vadd.f32 %v1111_v52, %v1043_v2  ;;  %v1230_v16 = vmin.f32 %v1198_v5, 6.0  ;;  %v643_v15 = vadd.f32 %v611_v6, %v542_v39  ;;  %v912_v24 = vmul.f32 %v3065_v25, %v2342_v35 }
  0x96   : > { %v928_v26 = vadd.f32 %v896_v23, %v827_v3  ;;  %v1012_v14 = vmul.f32 %v3074_v43, %v2352_v41  ;;  %v427_v33 = vadd.f32 %v395_v4, %v295_v62  ;;  %v596_v38 = vmul.f32 %v2985_v55, %v2314_v20 }
  0x97   : > { %v1182_v44 = vadd.f32 %v3079_v37, %v1143_v0  ;;  %1989 = vmatprep.mubr.f32.mxu0 %v1230_v16  ;;  %v743_v60 = vadd.f32 %v711_v54, %v643_v15  ;;  %v1112_v46 = vmul.f32 %v2942_v34, %v3085_v57  ;;  %v696_v49 = vmul.f32 %v2988_v61, %v2324_v27  ;;  %v3105_v54 = vld [vmem:[%s2303_s8 + $0xc1] sm:$0xff] }
  0x98   : > { %v1028_v21 = vadd.f32 %v996_v7, %v928_v26  ;;  %v527_v22 = vadd.f32 %v495_v29, %v427_v33  ;;  %v311_v58 = vmul.f32 %v2892_v8, %v2305_v12  ;;  %v411_v52 = vmul.f32 %v2901_v10, %v2307_v13  ;;  %v3102_v7 = vld [vmem:[%s2303_s8 + $0xc0] sm:$0xff] }
  0x99   : > { %v1214_v53 = vmax.f32 %v1182_v44, 0.0  ;;  %v843_v31 = vadd.f32 %v811_v36, %v743_v60  ;;  %v796_v47 = vmul.f32 %v3006_v17, %v2338_v32  ;;  %v511_v45 = vmul.f32 %v2907_v42, %v2312_v19  ;;  %v3115_v42 = vld [vmem:[%s2303_s8 + $0xc2] sm:$0xff] }
  0x9a   : > { %v1128_v23 = vadd.f32 %v1096_v50, %v1028_v21  ;;  %v628_v2 = vadd.f32 %v596_v38, %v527_v22  ;;  %v443_v5 = vadd.f32 %v411_v52, %v311_v58  ;;  %v612_v8 = vmul.f32 %v3013_v11, %v2314_v20 }
  0x9b   : > { %v1246_v6 = vmin.f32 %v1214_v53, 6.0  ;;  %v944_v50 = vadd.f32 %v912_v24, %v843_v31  ;;  %v897_v3 = vmul.f32 %v3102_v7, %v2342_v35  ;;  %v997_v39 = vmul.f32 %v3105_v54, %v2352_v41 }
  0x9c   : > { %v1167_v10 = vadd.f32 %v3079_v37, %v1128_v23  ;;  %v728_v62 = vadd.f32 %v696_v49, %v628_v2  ;;  %v1097_v0 = vmul.f32 %v2942_v34, %v3115_v42  ;;  %v543_v36 = vadd.f32 %v511_v45, %v443_v5  ;;  %v3130_v49 = vld [vmem:[%s2303_s8 + $0x180] sm:$0xff] }
  0x9d   : > { %2013 = vmatprep.mubr.f32.mxu1 %v1246_v6  ;;  %v712_v4 = vmul.f32 %v3021_v56, %v2324_v27  ;;  %v1044_v16 = vadd.f32 %v1012_v14, %v944_v50  ;;  %v296_v26 = vmul.f32 %v2924_v30, %v2305_v12  ;;  %v396_v15 = vmul.f32 %v2927_v18, %v2307_v13  ;;  %v3133_v14 = vld [vmem:[%s2303_s8 + $0x181] sm:$0xff] }
  0x9e   : > { %v1199_v29 = vmax.f32 %v1167_v10, 0.0  ;;  %v828_v24 = vadd.f32 %v796_v47, %v728_v62  ;;  %v644_v44 = vadd.f32 %v612_v8, %v543_v36  ;;  %v812_v33 = vmul.f32 %v3032_v40, %v2338_v32  ;;  %v3142_v23 = vld [vmem:[%s2303_s8 + $0x182] sm:$0xff] }
  0x9f   : > { %v496_v38 = vmul.f32 %v2937_v48, %v2312_v19  ;;  %v1144_v60 = vadd.f32 %v1112_v46, %v1044_v16  ;;  %v428_v53 = vadd.f32 %v396_v15, %v296_v26  ;;  %v597_v30 = vmul.f32 %v3035_v9, %v2314_v20 }
  0xa0   : > { %v1231_v21 = vmin.f32 %v1199_v29, 6.0  ;;  %v929_v22 = vadd.f32 %v897_v3, %v828_v24  ;;  %v744_v18 = vadd.f32 %v712_v4, %v644_v44  ;;  %v913_v58 = vmul.f32 %v3130_v49, %v2342_v35  ;;  %v3158_v4 = vld [vmem:[%s2303_s8 + $0xc8] sm:$0xff] }
  0xa1   : > { %v1013_v52 = vmul.f32 %v3133_v14, %v2352_v41  ;;  %v1183_v48 = vadd.f32 %v3079_v37, %v1144_v60  ;;  %v1113_v46 = vmul.f32 %v2942_v34, %v3142_v23  ;;  %v528_v31 = vadd.f32 %v496_v38, %v428_v53 }
  0xa2   : > { %1990 = vmatmul.mubr.f32.gmra.mxu0 %v1231_v21  ;;  %v697_v47 = vmul.f32 %v3047_v1, %v2324_v27  ;;  %v1029_v45 = vadd.f32 %v997_v39, %v929_v22  ;;  %v844_v6 = vadd.f32 %v812_v33, %v744_v18  ;;  %v312_v2 = vmul.f32 %v2957_v63, %v2305_v12  ;;  %v3161_v39 = vld [vmem:[%s2303_s8 + $0xc9] sm:$0xff] }
  0xa3   : > { %v412_v5 = vmul.f32 %v2960_v59, %v2307_v13  ;;  %v1215_v8 = vmax.f32 %v1183_v48, 0.0  ;;  %v629_v10 = vadd.f32 %v597_v30, %v528_v31  ;;  %v797_v50 = vmul.f32 %v3050_v51, %v2338_v32  ;;  %v3179_v22 = vld [vmem:[%s2303_s8 + $0xca] sm:$0xff] }
  0xa4   : > { %v512_v3 = vmul.f32 %v2969_v28, %v2312_v19  ;;  %v1129_v62 = vadd.f32 %v1097_v0, %v1029_v45  ;;  %v945_v36 = vadd.f32 %v913_v58, %v844_v6  ;;  %v613_v63 = vmul.f32 %v3065_v25, %v2314_v20  ;;  %v3186_v31 = vld [vmem:[%s2303_s8 + $0x188] sm:$0xff] }
  0xa5   : > { %v444_v29 = vadd.f32 %v412_v5, %v312_v2  ;;  %v1247_v59 = vmin.f32 %v1215_v8, 6.0  ;;  %v729_v16 = vadd.f32 %v697_v47, %v629_v10  ;;  %v898_v26 = vmul.f32 %v3158_v4, %v2342_v35 }
  0xa6   : > { %v998_v15 = vmul.f32 %v3161_v39, %v2352_v41  ;;  %v1168_v28 = vadd.f32 %v3079_v37, %v1129_v62  ;;  %v1045_v0 = vadd.f32 %v1013_v52, %v945_v36  ;;  %v713_v44 = vmul.f32 %v3074_v43, %v2324_v27 }
  0xa7   : > { %v544_v24 = vadd.f32 %v512_v3, %v444_v29  ;;  %2014 = vmatmul.mubr.f32.gmra.mxu1 %v1247_v59  ;;  %v829_v33 = vadd.f32 %v797_v50, %v729_v16  ;;  %v813_v38 = vmul.f32 %v3085_v57, %v2338_v32  ;;  %v297_v21 = vmul.f32 %v2985_v55, %v2305_v12  ;;  %v1835_v16 = vld [vmem:[%s2303_s8 + $0xd9] sm:$0xff] }
  0xa8   : > { %v397_v60 = vmul.f32 %v2988_v61, %v2307_v13  ;;  %v1200_v53 = vmax.f32 %v1168_v28, 0.0  ;;  %v1145_v30 = vadd.f32 %v1113_v46, %v1045_v0  ;;  %v497_v58 = vmul.f32 %v3006_v17, %v2312_v19  ;;  %v3194_v17 = vld [vmem:[%s2303_s8 + $0x189] sm:$0xff] }
  0xa9   : > { %v645_v18 = vadd.f32 %v613_v63, %v544_v24  ;;  %v930_v52 = vadd.f32 %v898_v26, %v829_v33  ;;  %v1098_v48 = vmul.f32 %v2942_v34, %v3179_v22  ;;  %v598_v47 = vmul.f32 %v3102_v7, %v2314_v20  ;;  %v1803_v7 = vld [vmem:[%s2303_s8 + $0xd8] sm:$0xff]  ;;  %v3206_v63 = vld [vmem:[%s2303_s8 + $0x18a] sm:$0xff] }
  0xaa   : > { %v429_v55 = vadd.f32 %v397_v60, %v297_v21  ;;  %v1232_v61 = vmin.f32 %v1200_v53, 6.0  ;;  %v1184_v46 = vadd.f32 %v3079_v37, %v1145_v30  ;;  %v914_v6 = vmul.f32 %v3186_v31, %v2342_v35 }
  0xab   : > { %v745_v45 = vadd.f32 %v713_v44, %v645_v18  ;;  %v1030_v2 = vadd.f32 %v998_v15, %v930_v52  ;;  %v1014_v5 = vmul.f32 %v3194_v17, %v2352_v41  ;;  %v698_v10 = vmul.f32 %v3105_v54, %v2324_v27  ;;  %v1867_v44 = vld [vmem:[%s2303_s8 + $0xda] sm:$0xff] }
  0xac   : > { %v529_v8 = vadd.f32 %v497_v58, %v429_v55  ;;  %1992 = vmatprep.mubr.f32.mxu0 %v1232_v61  ;;  %v1216_v50 = vmax.f32 %v1184_v46, 0.0  ;;  %v798_v62 = vmul.f32 %v3115_v42, %v2338_v32  ;;  %v313_v36 = vmul.f32 %v3013_v11, %v2305_v12  ;;  %v1819_v18 = vld [vmem:[%s2303_s8 + $0x198] sm:$0xff] }
  0xad   : > { %v845_v3 = vadd.f32 %v813_v38, %v745_v45  ;;  %v1130_v29 = vadd.f32 %v1098_v48, %v1030_v2  ;;  %v413_v26 = vmul.f32 %v3021_v56, %v2307_v13  ;;  %v513_v54 = vmul.f32 %v3032_v40, %v2312_v19  ;;  %v1851_v55 = vld [vmem:[%s2303_s8 + $0x199] sm:$0xff] }
  0xae   : > { %v630_v59 = vadd.f32 %v598_v47, %v529_v8  ;;  %v1248_v15 = vmin.f32 %v1216_v50, 6.0  ;;  %v1114_v42 = vmul.f32 %v2942_v34, %v3206_v63  ;;  %v899_v0 = vmul.f32 %v1803_v7, %v2342_v35  ;;  %v1883_v50 = vld [vmem:[%s2303_s8 + $0x19a] sm:$0xff] }
  0xaf   : > { %v946_v28 = vadd.f32 %v914_v6, %v845_v3  ;;  %v1169_v11 = vadd.f32 %v3079_v37, %v1130_v29  ;;  %v445_v33 = vadd.f32 %v413_v26, %v313_v36  ;;  %v614_v56 = vmul.f32 %v3130_v49, %v2314_v20 }
  0xb0   : > { %v730_v24 = vadd.f32 %v698_v10, %v630_v59  ;;  %2016 = vmatprep.mubr.f32.mxu1 %v1248_v15  ;;  %v999_v40 = vmul.f32 %v1835_v16, %v2352_v41  ;;  %v714_v21 = vmul.f32 %v3133_v14, %v2324_v27  ;;  %v298_v58 = vmul.f32 %v3035_v9, %v2305_v12  ;;  %v1804_v59 = vld [vmem:[%s2303_s8 + $0xe0] sm:$0xff] }
  0xb1   : > { %v1046_v38 = vadd.f32 %v1014_v5, %v946_v28  ;;  %v1201_v60 = vmax.f32 %v1169_v11, 0.0  ;;  %v545_v30 = vadd.f32 %v513_v54, %v445_v33  ;;  %v1099_v48 = vmul.f32 %v2942_v34, %v1867_v44  ;;  %v1836_v15 = vld [vmem:[%s2303_s8 + $0xe1] sm:$0xff] }
  0xb2   : > { %v830_v53 = vadd.f32 %v798_v62, %v730_v24  ;;  %v398_v49 = vmul.f32 %v3047_v1, %v2307_v13  ;;  %v498_v47 = vmul.f32 %v3050_v51, %v2312_v19  ;;  %v814_v45 = vmul.f32 %v3142_v23, %v2338_v32  ;;  %v1868_v11 = vld [vmem:[%s2303_s8 + $0xe2] sm:$0xff] }
  0xb3   : > { %v1146_v52 = vadd.f32 %v1114_v42, %v1046_v38  ;;  %v1233_v61 = vmin.f32 %v1201_v60, 6.0  ;;  %v646_v46 = vadd.f32 %v614_v56, %v545_v30  ;;  %v915_v9 = vmul.f32 %v1819_v18, %v2342_v35  ;;  %v1884_v30 = vld [vmem:[%s2303_s8 + $0x1a2] sm:$0xff] }
  0xb4   : > { %v931_v14 = vadd.f32 %v899_v0, %v830_v53  ;;  %v430_v2 = vadd.f32 %v398_v49, %v298_v58  ;;  %v599_v5 = vmul.f32 %v3158_v4, %v2314_v20  ;;  %v1015_v51 = vmul.f32 %v1851_v55, %v2352_v41 }
  0xb5   : > { %v1185_v6 = vadd.f32 %v3079_v37, %v1146_v52  ;;  %1993 = vmatmul.mubr.f32.gmra.mxu0 %v1233_v61  ;;  %v746_v8 = vadd.f32 %v714_v21, %v646_v46  ;;  %v699_v10 = vmul.f32 %v3161_v39, %v2324_v27  ;;  %v314_v3 = vmul.f32 %v3065_v25, %v2305_v12 }
  0xb6   : > { %v1031_v1 = vadd.f32 %v999_v40, %v931_v14  ;;  %v530_v23 = vadd.f32 %v498_v47, %v430_v2  ;;  %v414_v62 = vmul.f32 %v3074_v43, %v2307_v13  ;;  %v799_v29 = vmul.f32 %v3179_v22, %v2338_v32  ;;  %v1852_v40 = vld [vmem:[%s2303_s8 + $0x1a1] sm:$0xff] }
  0xb7   : > { %v1217_v7 = vmax.f32 %v1185_v6, 0.0  ;;  %v846_v4 = vadd.f32 %v814_v45, %v746_v8  ;;  %v514_v16 = vmul.f32 %v3085_v57, %v2312_v19  ;;  %v615_v12 = vmul.f32 %v3186_v31, %v2314_v20  ;;  %v1820_v20 = vld [vmem:[%s2303_s8 + $0x1a0] sm:$0xff]  ;;  %s234_s8 = sand.u32 1, %s2174_s19  }
  0xb8   : > { %v1131_v36 = vadd.f32 %v1099_v48, %v1031_v1  ;;  %v631_v26 = vadd.f32 %v599_v5, %v530_v23  ;;  %v446_v54 = vadd.f32 %v414_v62, %v314_v3  ;;  %v1115_v43 = vmul.f32 %v2942_v34, %v1883_v50  ;;  %s1691_s13 = sshll.u32 %s234_s8, 8  ;;  %s3358_s27 = scalar_lea.sflag [#allocation3], %s234_s8 }
  0xb9   : > { %v1249_v39 = vmin.f32 %v1217_v7, 6.0  ;;  %v947_v13 = vadd.f32 %v915_v9, %v846_v4  ;;  %v900_v28 = vmul.f32 %v1804_v59, %v2342_v35  ;;  %v715_v57 = vmul.f32 %v3194_v17, %v2324_v27  ;;  %s3283_s14 = scalar_lea.vmem [#allocation2], %s1691_s13 }
  0xba   : > { %v1170_v25 = vadd.f32 %v3079_v37, %v1131_v36  ;;  %v731_v22 = vadd.f32 %v699_v10, %v631_v26  ;;  %v546_v19 = vadd.f32 %v514_v16, %v446_v54  ;;  %v1000_v24 = vmul.f32 %v1836_v15, %v2352_v41  ;;  %s1613_s16 = sshll.u32 %s3283_s14, 4  ;;  %s3352_s16 = int_to_ptr.vmem [resolvable:$true] %s1613_s16 }
  0xbb   : > { %2017 = vmatmul.mubr.f32.gmra.mxu1 %v1249_v39  ;;  %v1047_v0 = vadd.f32 %v1015_v51, %v947_v13  ;;  %v815_v33 = vmul.f32 %v3206_v63, %v2338_v32  ;;  %v1100_v60 = vmul.f32 %v2942_v34, %v1868_v11  ;;  %v916_v27 = vmul.f32 %v1820_v20, %v2342_v35  ;;  %s2114_s21 = scalar_lea.vmem %s3352_s16, 4096  ;;  %p2121_p1 = scmp.lt.s32.totalorder %s3352_s16, %s2119_s7 }
  0xbc   : > { %v1202_v42 = vmax.f32 %v1170_v25, 0.0  ;;  %v831_v31 = vadd.f32 %v799_v29, %v731_v22  ;;  %v647_v44 = vadd.f32 %v615_v12, %v546_v19  ;;  %v1016_v52 = vmul.f32 %v1852_v40, %v2352_v41  ;;  %p2115_p12 = scmp.ne.s32.totalorder %s3352_s16, %s2114_s21  ;;  %p2122_p2 = scmp.lt.s32.totalorder %s2120_s9, %s2114_s21 }
  0xbd   : > { %v1147_v38 = vadd.f32 %v1115_v43, %v1047_v0  ;;  %v1116_v55 = vmul.f32 %v2942_v34, %v1884_v30  ;;  %v3277_v34 = vld [vmem:[%s3407_s4] ss:$0 sm:$0xff] }
  0xbe   : > { %v1234_v56 = vmin.f32 %v1202_v42, 6.0  ;;  %v932_v21 = vadd.f32 %v900_v28, %v831_v31  ;;  %v747_v53 = vadd.f32 %v715_v57, %v647_v44  ;;  %p2116_p13 = pnand %p2115_p12, %p2265_p4  ;;  %p2123_p3 = por %p2122_p2, %p2121_p1 }
  0xbf   : > { %v1186_v17 = vadd.f32 %v3079_v37, %v1147_v38 }
  0xc0   : > { %1995 = vmatprep.mubr.f32.mxu0 %v1234_v56  ;;  %v1032_v18 = vadd.f32 %v1000_v24, %v932_v21  ;;  %v847_v58 = vadd.f32 %v815_v33, %v747_v53  ;;  %p2117_p0 = pneg %p2116_p13 }
  0xc1   : > { %v1218_v48 = vmax.f32 %v1186_v17, 0.0 }
  0xc2   : > { %v1132_v32 = vadd.f32 %v1100_v60, %v1032_v18  ;;  %v948_v63 = vadd.f32 %v916_v27, %v847_v58  ;;  %p2124_p5 = pnand %p2123_p3, %p2117_p0 }
  0xc3   : > { %v1250_v49 = vmin.f32 %v1218_v48, 6.0 }
  0xc4   : > { %v1171_v47 = vadd.f32 %v3079_v37, %v1132_v32  ;;  %v1048_v61 = vadd.f32 %v1016_v52, %v948_v63 }
  0xc5   : > { %2019 = vmatprep.mubr.f32.mxu1 %v1250_v49 }
  0xc6   : > { %v1203_v35 = vmax.f32 %v1171_v47, 0.0  ;;  %v1148_v14 = vadd.f32 %v1116_v55, %v1048_v61 }
  0xc8   : > { %v1235_v46 = vmin.f32 %v1203_v35, 6.0  ;;  %v1187_v45 = vadd.f32 %v3079_v37, %v1148_v14 }
  0xca   : > { %1996 = vmatmul.mubr.f32.gmra.mxu0 %v1235_v46  ;;  %v1219_v6 = vmax.f32 %v1187_v45, 0.0 }
  0xcc   : > { %v1251_v41 = vmin.f32 %v1219_v6, 6.0 }
  0xce   : > { %2020 = vmatmul.mubr.f32.gmra.mxu1 %v1251_v41 }
  0xfc   : > { %v1976_v9 = vpop.f32.mrf.mxu0 }
  0xfd   : > { %v1347_v2 = vadd.f32 %v1976_v9, %v3277_v34 }
  0xfe   : > { %v1341_v5 = vpop.f32.mrf.mxu0 }
  0xff   : > { %v1501_v1 = vmax.f32 %v1347_v2, 0.0  ;;  %v1342_v8 = vadd.f32 %v3277_v34, %v1341_v5 }
 0x101   : > { %v1533_v37 = vmin.f32 %v1501_v1, 6.0  ;;  %v1500_v51 = vmax.f32 %v1342_v8, 0.0 }
 0x102   : > { %v2000_v10 = vpop.f32.mrf.mxu1 }
 0x103   : > { %1565 = vst [vmem:[%s3283_s14 + $0x8] sm:$0xff] %v1533_v37  ;;  %v1427_v7 = vadd.f32 %v2000_v10, %v3277_v34  ;;  %v1532_v50 = vmin.f32 %v1500_v51, 6.0 }
 0x104   : > { %v1421_v23 = vpop.f32.mrf.mxu1 }
 0x105   : > { %v1517_v3 = vmax.f32 %v1427_v7, 0.0  ;;  %1564 = vst [vmem:[%s3283_s14] sm:$0xff] %v1532_v50  ;;  %v1422_v62 = vadd.f32 %v3277_v34, %v1421_v23 }
 0x107   : > { %v1549_v36 = vmin.f32 %v1517_v3, 6.0  ;;  %v1516_v4 = vmax.f32 %v1422_v62, 0.0 }
 0x109   : > { %1581 = vst [vmem:[%s3283_s14 + $0x88] sm:$0xff] %v1549_v36  ;;  %v1548_v29 = vmin.f32 %v1516_v4, 6.0 }
 0x10b   : > { %1580 = vst [vmem:[%s3283_s14 + $0x80] sm:$0xff] %v1548_v29 }
 0x112   : > { %v1979_v59 = vpop.f32.mrf.mxu0 }
 0x113   : > { %v1357_v16 = vadd.f32 %v1979_v59, %v3277_v34 }
 0x114   : > { %v1351_v39 = vpop.f32.mrf.mxu0 }
 0x115   : > { %v1503_v26 = vmax.f32 %v1357_v16, 0.0  ;;  %v1352_v54 = vadd.f32 %v3277_v34, %v1351_v39 }
 0x116   : > { %v2003_v12 = vpop.f32.mrf.mxu1 }
 0x117   : > { %v1535_v25 = vmin.f32 %v1503_v26, 6.0  ;;  %v1437_v13 = vadd.f32 %v2003_v12, %v3277_v34  ;;  %v1502_v43 = vmax.f32 %v1352_v54, 0.0 }
 0x118   : > { %v1431_v15 = vpop.f32.mrf.mxu1 }
 0x119   : > { %1567 = vst [vmem:[%s3283_s14 + $0x18] sm:$0xff] %v1535_v25  ;;  %v1519_v22 = vmax.f32 %v1437_v13, 0.0  ;;  %v1534_v28 = vmin.f32 %v1502_v43, 6.0  ;;  %v1432_v19 = vadd.f32 %v3277_v34, %v1431_v15 }
 0x11b   : > { %v1551_v57 = vmin.f32 %v1519_v22, 6.0  ;;  %1566 = vst [vmem:[%s3283_s14 + $0x10] sm:$0xff] %v1534_v28  ;;  %v1518_v42 = vmax.f32 %v1432_v19, 0.0 }
 0x11d   : > { %1583 = vst [vmem:[%s3283_s14 + $0x98] sm:$0xff] %v1551_v57  ;;  %v1550_v0 = vmin.f32 %v1518_v42, 6.0 }
 0x11f   : > { %1582 = vst [vmem:[%s3283_s14 + $0x90] sm:$0xff] %v1550_v0 }
 0x126   : > { %v1982_v11 = vpop.f32.mrf.mxu0 }
 0x127   : > { %v1367_v20 = vadd.f32 %v1982_v11, %v3277_v34 }
 0x128   : > { %v1361_v31 = vpop.f32.mrf.mxu0 }
 0x129   : > { %v1505_v24 = vmax.f32 %v1367_v20, 0.0  ;;  %v1362_v44 = vadd.f32 %v3277_v34, %v1361_v31 }
 0x12b   : > { %v1537_v33 = vmin.f32 %v1505_v24, 6.0  ;;  %v1504_v56 = vmax.f32 %v1362_v44, 0.0  ;;  %v2006_v38 = vpop.f32.mrf.mxu1 }
 0x12c   : > { %v1447_v40 = vadd.f32 %v2006_v38, %v3277_v34 }
 0x12d   : > { %1569 = vst [vmem:[%s3283_s14 + $0x28] sm:$0xff] %v1537_v33  ;;  %v1536_v21 = vmin.f32 %v1504_v56, 6.0  ;;  %v1441_v60 = vpop.f32.mrf.mxu1 }
 0x12e   : > { %v1521_v53 = vmax.f32 %v1447_v40, 0.0  ;;  %v1442_v27 = vadd.f32 %v3277_v34, %v1441_v60 }
 0x12f   : > { %1568 = vst [vmem:[%s3283_s14 + $0x20] sm:$0xff] %v1536_v21 }
 0x130   : > { %v1553_v17 = vmin.f32 %v1521_v53, 6.0  ;;  %v1520_v30 = vmax.f32 %v1442_v27, 0.0 }
 0x132   : > { %1585 = vst [vmem:[%s3283_s14 + $0xa8] sm:$0xff] %v1553_v17  ;;  %v1552_v18 = vmin.f32 %v1520_v30, 6.0 }
 0x134   : > { %1584 = vst [vmem:[%s3283_s14 + $0xa0] sm:$0xff] %v1552_v18 }
 0x139   : > { %v1985_v58 = vpop.f32.mrf.mxu0 }
 0x13a   : > { %v1377_v52 = vadd.f32 %v1985_v58, %v3277_v34 }
 0x13b   : > { %v1371_v48 = vpop.f32.mrf.mxu0 }
 0x13c   : > { %v1507_v32 = vmax.f32 %v1377_v52, 0.0  ;;  %v1372_v63 = vadd.f32 %v3277_v34, %v1371_v48 }
 0x13e   : > { %v1539_v55 = vmin.f32 %v1507_v32, 6.0  ;;  %v1506_v47 = vmax.f32 %v1372_v63, 0.0 }
 0x13f   : > { %v2009_v49 = vpop.f32.mrf.mxu1 }
 0x140   : > { %v1457_v61 = vadd.f32 %v2009_v49, %v3277_v34  ;;  %1571 = vst [vmem:[%s3283_s14 + $0x38] sm:$0xff] %v1539_v55  ;;  %v1538_v35 = vmin.f32 %v1506_v47, 6.0 }
 0x141   : > { %v1451_v14 = vpop.f32.mrf.mxu1 }
 0x142   : > { %v1523_v46 = vmax.f32 %v1457_v61, 0.0  ;;  %v1452_v45 = vadd.f32 %v3277_v34, %v1451_v14  ;;  %1570 = vst [vmem:[%s3283_s14 + $0x30] sm:$0xff] %v1538_v35 }
 0x144   : > { %v1555_v6 = vmin.f32 %v1523_v46, 6.0  ;;  %v1522_v41 = vmax.f32 %v1452_v45, 0.0 }
 0x146   : > { %1587 = vst [vmem:[%s3283_s14 + $0xb8] sm:$0xff] %v1555_v6  ;;  %v1554_v9 = vmin.f32 %v1522_v41, 6.0 }
 0x148   : > { %1586 = vst [vmem:[%s3283_s14 + $0xb0] sm:$0xff] %v1554_v9 }
 0x14e   : > { %v1988_v2 = vpop.f32.mrf.mxu0 }
 0x14f   : > { %v1387_v5 = vadd.f32 %v1988_v2, %v3277_v34 }
 0x150   : > { %v1381_v1 = vpop.f32.mrf.mxu0 }
 0x151   : > { %v1509_v8 = vmax.f32 %v1387_v5, 0.0  ;;  %v1382_v37 = vadd.f32 %v3277_v34, %v1381_v1 }
 0x152   : > { %v2012_v51 = vpop.f32.mrf.mxu1 }
 0x153   : > { %v1541_v10 = vmin.f32 %v1509_v8, 6.0  ;;  %v1467_v7 = vadd.f32 %v2012_v51, %v3277_v34  ;;  %v1508_v50 = vmax.f32 %v1382_v37, 0.0 }
 0x154   : > { %v1461_v23 = vpop.f32.mrf.mxu1 }
 0x155   : > { %1573 = vst [vmem:[%s3283_s14 + $0x48] sm:$0xff] %v1541_v10  ;;  %v1525_v3 = vmax.f32 %v1467_v7, 0.0  ;;  %v1540_v62 = vmin.f32 %v1508_v50, 6.0  ;;  %v1462_v36 = vadd.f32 %v3277_v34, %v1461_v23 }
 0x157   : > { %v1557_v4 = vmin.f32 %v1525_v3, 6.0  ;;  %1572 = vst [vmem:[%s3283_s14 + $0x40] sm:$0xff] %v1540_v62  ;;  %v1524_v29 = vmax.f32 %v1462_v36, 0.0 }
 0x159   : > { %1589 = vst [vmem:[%s3283_s14 + $0xc8] sm:$0xff] %v1557_v4  ;;  %v1556_v59 = vmin.f32 %v1524_v29, 6.0 }
 0x15b   : > { %1588 = vst [vmem:[%s3283_s14 + $0xc0] sm:$0xff] %v1556_v59 }
 0x162   : > { %v1991_v16 = vpop.f32.mrf.mxu0 }
 0x163   : > { %v1397_v39 = vadd.f32 %v1991_v16, %v3277_v34 }
 0x164   : > { %v1391_v26 = vpop.f32.mrf.mxu0 }
 0x165   : > { %v1511_v54 = vmax.f32 %v1397_v39, 0.0  ;;  %v1392_v12 = vadd.f32 %v3277_v34, %v1391_v26 }
 0x167   : > { %v1543_v25 = vmin.f32 %v1511_v54, 6.0  ;;  %v1510_v13 = vmax.f32 %v1392_v12, 0.0  ;;  %v2015_v43 = vpop.f32.mrf.mxu1 }
 0x168   : > { %v1477_v15 = vadd.f32 %v2015_v43, %v3277_v34 }
 0x169   : > { %1575 = vst [vmem:[%s3283_s14 + $0x58] sm:$0xff] %v1543_v25  ;;  %v1542_v22 = vmin.f32 %v1510_v13, 6.0  ;;  %v1471_v28 = vpop.f32.mrf.mxu1 }
 0x16a   : > { %v1527_v19 = vmax.f32 %v1477_v15, 0.0  ;;  %v1472_v57 = vadd.f32 %v3277_v34, %v1471_v28 }
 0x16b   : > { %1574 = vst [vmem:[%s3283_s14 + $0x50] sm:$0xff] %v1542_v22 }
 0x16c   : > { %v1559_v42 = vmin.f32 %v1527_v19, 6.0  ;;  %v1526_v0 = vmax.f32 %v1472_v57, 0.0 }
 0x16e   : > { %1591 = vst [vmem:[%s3283_s14 + $0xd8] sm:$0xff] %v1559_v42  ;;  %v1558_v11 = vmin.f32 %v1526_v0, 6.0 }
 0x170   : > { %1590 = vst [vmem:[%s3283_s14 + $0xd0] sm:$0xff] %v1558_v11 }
 0x175   : > { %v1994_v20 = vpop.f32.mrf.mxu0 }
 0x176   : > { %v1407_v31 = vadd.f32 %v1994_v20, %v3277_v34 }
 0x177   : > { %v1401_v24 = vpop.f32.mrf.mxu0 }
 0x178   : > { %v1513_v44 = vmax.f32 %v1407_v31, 0.0  ;;  %v1402_v33 = vadd.f32 %v3277_v34, %v1401_v24 }
 0x17a   : > { %v1545_v56 = vmin.f32 %v1513_v44, 6.0  ;;  %v1512_v40 = vmax.f32 %v1402_v33, 0.0 }
 0x17b   : > { %v2018_v38 = vpop.f32.mrf.mxu1 }
 0x17c   : > { %v1487_v21 = vadd.f32 %v2018_v38, %v3277_v34  ;;  %1577 = vst [vmem:[%s3283_s14 + $0x68] sm:$0xff] %v1545_v56  ;;  %v1544_v60 = vmin.f32 %v1512_v40, 6.0 }
 0x17d   : > { %v1481_v53 = vpop.f32.mrf.mxu1 }
 0x17e   : > { %v1529_v27 = vmax.f32 %v1487_v21, 0.0  ;;  %v1482_v17 = vadd.f32 %v3277_v34, %v1481_v53  ;;  %1576 = vst [vmem:[%s3283_s14 + $0x60] sm:$0xff] %v1544_v60 }
 0x180   : > { %v1561_v30 = vmin.f32 %v1529_v27, 6.0  ;;  %v1528_v18 = vmax.f32 %v1482_v17, 0.0 }
 0x182   : > { %1593 = vst [vmem:[%s3283_s14 + $0xe8] sm:$0xff] %v1561_v30  ;;  %v1560_v58 = vmin.f32 %v1528_v18, 6.0 }
 0x184   : > { %1592 = vst [vmem:[%s3283_s14 + $0xe0] sm:$0xff] %v1560_v58 }
 0x18a   : > { %v1997_v52 = vpop.f32.mrf.mxu0 }
 0x18b   : > { %v1417_v48 = vadd.f32 %v1997_v52, %v3277_v34 }
 0x18c   : > { %v1411_v32 = vpop.f32.mrf.mxu0 }
 0x18d   : > { %v1515_v63 = vmax.f32 %v1417_v48, 0.0  ;;  %v1412_v55 = vadd.f32 %v3277_v34, %v1411_v32 }
 0x18e   : > { %v2021_v49 = vpop.f32.mrf.mxu1 }
 0x18f   : > { %v1547_v47 = vmin.f32 %v1515_v63, 6.0  ;;  %v1497_v61 = vadd.f32 %v2021_v49, %v3277_v34  ;;  %v1514_v35 = vmax.f32 %v1412_v55, 0.0 }
 0x190   : > { %v1491_v14 = vpop.f32.mrf.mxu1 }
 0x191   : > { %1579 = vst [vmem:[%s3283_s14 + $0x78] sm:$0xff] %v1547_v47  ;;  %v1531_v46 = vmax.f32 %v1497_v61, 0.0  ;;  %v1546_v45 = vmin.f32 %v1514_v35, 6.0  ;;  %v1492_v6 = vadd.f32 %v3277_v34, %v1491_v14 }
 0x193   : > { %v1563_v41 = vmin.f32 %v1531_v46, 6.0  ;;  %1578 = vst [vmem:[%s3283_s14 + $0x70] sm:$0xff] %v1546_v45  ;;  %v1530_v9 = vmax.f32 %v1492_v6, 0.0 }
 0x195   : > { %1595 = vst [vmem:[%s3283_s14 + $0xf8] sm:$0xff] %v1563_v41  ;;  %v1562_v2 = vmin.f32 %v1530_v9, 6.0 }
 0x197   : > { %1594 = vst [vmem:[%s3283_s14 + $0xf0] sm:$0xff] %v1562_v2 }
 0x198   : > { %2127 = shalt.err (!%p2124_p5)
}
 0x199   : > { %s2128_s10 = scalar_lea.hbm %s3350_s25, 4096  ;;  %s2132_s12 = scalar_lea.hbm %s3408_s5, 8192 }
 0x19a   : > { %p2129_p6 = scmp.ne.s32.totalorder %s3350_s25, %s2128_s10  ;;  %p2133_p10 = scmp.lt.s32.totalorder %s3350_s25, %s3408_s5 }
 0x19b   : > { %p2134_p11 = scmp.lt.s32.totalorder %s2132_s12, %s2128_s10 }
 0x19c   : > { %p2130_p7 = pnand %p2129_p6, %p2265_p4 }
 0x19d   : > { %p2135_p12 = por %p2134_p11, %p2133_p10 }
 0x19e   : > { %p2131_p9 = pneg %p2130_p7 }
 0x1a0   : > { %p2136_p13 = pnand %p2135_p12, %p2131_p9 }
 0x1a2   : > { %2139 = shalt.err (!%p2136_p13)
}
 0x1a3   : > { %s2193_s15 = smov 128   ;;  %s2194_s17 = smov 8  }
 0x1a4   : > { %2055 = dma.vmem_to_hbm [thread:$0]  (%p2265_p4), %s3352_s16, 4096, %s3350_s25, %s3358_s27, %s2193_s15, %s2193_s15, %s2194_s17  }
 0x1a5 PF: > { %p2061_p0 = scmp.ge.s32.totalorder %s2190_s23, 2  ;;  %s1628_s24 = sand.u32 1, %s2170_s18  }
 0x1a6   : > { %s1629_s21 = scalar_lea.sflag [#allocation3], %s1628_s24 }
 0x1a7   : > { %p2058_p1 = pnand %p2061_p0, %p2272_p8 }
 0x1a9   : > { %p2059_p2 = pneg %p2058_p1 }
 0x1ab   : > { %2165 = dma.done.wait (%p2059_p2), %s1629_s21, 4096  }
 0x1ac   : > { %2167 = vsyncadd (%p2059_p2), %s1629_s21, 4294963200  ;;  %s18_s23 = sadd.s32 1, %s2190_s23   ;;  %s3411_s18 = smov %s2174_s19 }
 0x1ad   : > { %p15_p3 = scmp.ge.s32.totalorder %s18_s23, 4   ;;  %s3412_s19 = smov %s2178_s20 }
 0x1ae   : > { %s3413_s20 = smov %s2278_s6  ;;  %s3414_s21 = smov %s2186_s22 }
 0x1af   : > { %s3415_s22 = smov %s3417_s26  ;;  %17 = sbr.rel (!%p15_p3) target bundleno = 4 (0x4), region = 77 }
 0x1b4   :  { %1634 = vsyncpa [#allocation3], 1 }
 0x1b5   :  { %1636 = vsyncpa [#allocation3 + $0x1], 1 }

</bundles_post_ra>
